<compile_context>
chip_gen: v7x
topology: tpu7x:2x2x1
jax: 0.10.0
libtpu: 0.0.40
codegen_flags: <defaults>
</compile_context>

<pallas_src>
import jax
import jax.numpy as jnp
from jax.experimental import pallas as pl
from jax.experimental.pallas import tpu as pltpu

NUM_KEYPOINTS = 16
MAX_PEOPLE = 13
BN_EPS = 1e-5
LEAKY_SLOPE = 0.01                         # PyTorch nn.LeakyReLU default
OUT_DIM = NUM_KEYPOINTS * MAX_PEOPLE * 2   # 416
H1, H2 = 512, 256                          # pose_layer_sizes


def _round_up(n, m):
    return ((n + m - 1) // m) * m


# ---------------------------------------------------------------------------
# Kernel: one batch tile through the whole (BN-folded) 3-layer MLP.
# ---------------------------------------------------------------------------
def _head_kernel(x_ref, w1_ref, b1_ref, w2_ref, b2_ref, w3_ref, b3_ref, o_ref):
    # Block 1: Linear(+folded BN) -> ReLU -> Dropout (identity in eval).
    # x arrives in bf16; accumulate in f32 on the MXU.
    h = jnp.dot(x_ref[...], w1_ref[...],
                preferred_element_type=jnp.float32) + b1_ref[...]
    h = jnp.maximum(h, 0.0)

    # Block 2: Linear(+folded BN) -> LeakyReLU -> Dropout (identity in eval).
    h = jnp.dot(h.astype(jnp.bfloat16), w2_ref[...],
                preferred_element_type=jnp.float32) + b2_ref[...]
    h = jnp.where(h >= 0.0, h, LEAKY_SLOPE * h)

    # Output layer: true 416-wide store (no lane padding).
    out = jnp.dot(h.astype(jnp.bfloat16), w3_ref[...],
                  preferred_element_type=jnp.float32) + b3_ref[...]
    o_ref[...] = out.astype(o_ref.dtype)


# ---------------------------------------------------------------------------
# Parameter preparation: fold BN into Linear, cast weights to bf16.
# ---------------------------------------------------------------------------
def _fold_bn(w, b, gamma, beta, mean, var):
    scale = gamma / jnp.sqrt(var + BN_EPS)
    shift = beta - mean * scale
    return w * scale[None, :], b * scale + shift


def prepare_params(params, weight_dtype=jnp.bfloat16):
    w1, b1 = _fold_bn(params["w1"], params["b1"],
                      params["g1"], params["be1"], params["m1"], params["v1"])
    w2, b2 = _fold_bn(params["w2"], params["b2"],
                      params["g2"], params["be2"], params["m2"], params["v2"])
    return dict(
        w1=w1.astype(weight_dtype), b1=b1.reshape(1, -1).astype(jnp.float32),
        w2=w2.astype(weight_dtype), b2=b2.reshape(1, -1).astype(jnp.float32),
        w3=params["w3"].astype(weight_dtype),
        b3=params["b3"].reshape(1, -1).astype(jnp.float32),
    )


# ---------------------------------------------------------------------------
# Wrapper
# ---------------------------------------------------------------------------
def pose_head_forward(x, fused, *, block_b=512):
    """x: (B, F) float (cast to bf16). Returns (B, MAX_PEOPLE, NUM_KEYPOINTS, 2) f32."""
    B, F = x.shape
    x = x.astype(jnp.bfloat16)   # no-op if upstream already produces bf16

    # Batch tile: for B <= 8 one full-batch block (block dim == array dim is
    # always legal); otherwise a sublane-aligned tile sized so the grid has
    # >= 2 steps (both v7x TensorCores get work), capped at block_b.
    if B <= 8:
        tb = B
    else:
        tb = min(block_b, _round_up(pl.cdiv(B, 2), 8))
    grid = (pl.cdiv(B, tb),)

    weight_elems = F * H1 + H1 * H2 + H2 * OUT_DIM
    cost = pl.CostEstimate(
        flops=2 * B * weight_elems,
        transcendentals=0,
        bytes_accessed=(B * F * 2            # x (bf16)
                        + weight_elems * 2   # weights (bf16)
                        + (H1 + H2 + OUT_DIM) * 4   # biases (f32)
                        + B * OUT_DIM * 4))  # output (f32)

    def run(single_buffer_weights):
        def w_spec(shape):
            # Grid-invariant operands: stay resident; single-buffer if allowed.
            if single_buffer_weights:
                return pl.BlockSpec(shape, lambda i: (0, 0),
                                    pipeline_mode=pl.Buffered(1))
            return pl.BlockSpec(shape, lambda i: (0, 0))

        in_specs = [
            pl.BlockSpec((tb, F), lambda i: (i, 0)),   # x: tiled over batch
            w_spec(fused["w1"].shape), w_spec(fused["b1"].shape),
            w_spec(fused["w2"].shape), w_spec(fused["b2"].shape),
            w_spec(fused["w3"].shape), w_spec(fused["b3"].shape),
        ]
        return pl.pallas_call(
            _head_kernel,
            out_shape=jax.ShapeDtypeStruct((B, OUT_DIM), jnp.float32),
            grid=grid,
            in_specs=in_specs,
            out_specs=pl.BlockSpec((tb, OUT_DIM), lambda i: (i, 0)),
            compiler_params=pltpu.CompilerParams(
                dimension_semantics=("parallel",),  # v7x: shard batch tiles over 2 TCs
            ),
            cost_estimate=cost,
        )(x, fused["w1"], fused["b1"], fused["w2"], fused["b2"],
          fused["w3"], fused["b3"])

    try:
        out = jax.block_until_ready(run(True))
    except Exception:
        # Fallback for runtimes that reject Buffered(1): identical semantics,
        # default double-buffered (previously validated) pipeline.
        out = run(False)

    return out.reshape(B, MAX_PEOPLE, NUM_KEYPOINTS, 2)


# ---------------------------------------------------------------------------
# Synthetic parameters + references
# ---------------------------------------------------------------------------
def init_params(key, combined_feature_size, layer_sizes=(H1, H2)):
    """Deterministic synthetic parameters matching the PyTorch module shapes.
    Linear weights stored transposed: (in_features, out_features)."""
    dims = [combined_feature_size, layer_sizes[0], layer_sizes[1], OUT_DIM]
    keys = jax.random.split(key, 16)
    p = {}
    for i in range(3):
        fan_in, fan_out = dims[i], dims[i + 1]
        bound = 1.0 / jnp.sqrt(fan_in)
        p[f"w{i+1}"] = jax.random.uniform(keys[2 * i], (fan_in, fan_out),
                                          jnp.float32, -bound, bound)
        p[f"b{i+1}"] = jax.random.uniform(keys[2 * i + 1], (fan_out,),
                                          jnp.float32, -bound, bound)
    for i, n in enumerate(layer_sizes, start=1):
        k0, k1, k2, k3 = jax.random.split(keys[6 + i], 4)
        p[f"g{i}"] = 1.0 + 0.1 * jax.random.normal(k0, (n,), jnp.float32)
        p[f"be{i}"] = 0.1 * jax.random.normal(k1, (n,), jnp.float32)
        p[f"m{i}"] = 0.1 * jax.random.normal(k2, (n,), jnp.float32)
        p[f"v{i}"] = 1.0 + 0.1 * jax.random.uniform(k3, (n,), jnp.float32)
    return p


def reference_forward_f32(x, params):
    """Pure f32 reference mirroring the PyTorch eval-mode forward."""
    h = x @ params["w1"] + params["b1"]
    h = (h - params["m1"]) / jnp.sqrt(params["v1"] + BN_EPS) * params["g1"] + params["be1"]
    h = jnp.maximum(h, 0.0)
    h = h @ params["w2"] + params["b2"]
    h = (h - params["m2"]) / jnp.sqrt(params["v2"] + BN_EPS) * params["g2"] + params["be2"]
    h = jnp.where(h >= 0.0, h, LEAKY_SLOPE * h)
    h = h @ params["w3"] + params["b3"]
    return h.reshape(x.shape[0], MAX_PEOPLE, NUM_KEYPOINTS, 2)


def reference_forward_fused(x, fused):
    """Exact numeric mirror of the kernel (bf16 operands, f32 accumulation)."""
    h = jnp.dot(x.astype(jnp.bfloat16), fused["w1"],
                preferred_element_type=jnp.float32) + fused["b1"]
    h = jnp.maximum(h, 0.0)
    h = jnp.dot(h.astype(jnp.bfloat16), fused["w2"],
                preferred_element_type=jnp.float32) + fused["b2"]
    h = jnp.where(h >= 0.0, h, LEAKY_SLOPE * h)
    h = jnp.dot(h.astype(jnp.bfloat16), fused["w3"],
                preferred_element_type=jnp.float32) + fused["b3"]
    return h.reshape(x.shape[0], MAX_PEOPLE, NUM_KEYPOINTS, 2)


if __name__ == "__main__":
    key = jax.random.PRNGKey(0)
    k_x, k_p = jax.random.split(key)

    batch = 4
    combined_feature_size = 64  # small synthetic feature size

    x = jax.random.normal(k_x, (batch, combined_feature_size), jnp.float32)
    params = init_params(k_p, combined_feature_size)
    fused = prepare_params(params)

    out = pose_head_forward(x, fused)
    out = jax.block_until_ready(out)
    assert out.shape == (batch, MAX_PEOPLE, NUM_KEYPOINTS, 2), out.shape

    # Tight check vs an exact bf16-mirrored reference (catches kernel bugs).
    ref_exact = reference_forward_fused(x, fused)
    assert jnp.allclose(out, ref_exact, atol=2e-3, rtol=2e-3), "mismatch vs bf16 reference"

    # Looser check vs the full-f32 PyTorch eval-mode semantics (bf16 rounding only).
    ref_f32 = reference_forward_f32(x, params)
    assert jnp.allclose(out, ref_f32, atol=3e-2, rtol=3e-2), "mismatch vs f32 reference"

    print("KERNEL_OK")
</pallas_src>

<mosaic_0001>
module attributes {stable_mosaic.version = 11 : i64} {
  func.func @_head_kernel(%arg0: i32, %arg1: memref<4x64xbf16, #tpu.memory_space<vmem>>, %arg2: memref<64x512xbf16, #tpu.memory_space<vmem>>, %arg3: memref<1x512xf32, #tpu.memory_space<vmem>>, %arg4: memref<512x256xbf16, #tpu.memory_space<vmem>>, %arg5: memref<1x256xf32, #tpu.memory_space<vmem>>, %arg6: memref<256x416xbf16, #tpu.memory_space<vmem>>, %arg7: memref<1x416xf32, #tpu.memory_space<vmem>>, %arg8: memref<4x416xf32, #tpu.memory_space<vmem>>) attributes {dimension_semantics = [#tpu.dimension_semantics<parallel>], iteration_bounds = array<i64: 1>, scalar_prefetch = 0 : i64, scratch_operands = 0 : i64, tpu.core_type = #tpu.core_type<tc>, window_params = [{transform_indices = @transform_0, window_bounds = array<i64: 4, 64>}, {pipeline_mode = #tpu.pipeline_mode<synchronous>, transform_indices = @transform_1, window_bounds = array<i64: 64, 512>}, {pipeline_mode = #tpu.pipeline_mode<synchronous>, transform_indices = @transform_2, window_bounds = array<i64: 1, 512>}, {pipeline_mode = #tpu.pipeline_mode<synchronous>, transform_indices = @transform_3, window_bounds = array<i64: 512, 256>}, {pipeline_mode = #tpu.pipeline_mode<synchronous>, transform_indices = @transform_4, window_bounds = array<i64: 1, 256>}, {pipeline_mode = #tpu.pipeline_mode<synchronous>, transform_indices = @transform_5, window_bounds = array<i64: 256, 416>}, {pipeline_mode = #tpu.pipeline_mode<synchronous>, transform_indices = @transform_6, window_bounds = array<i64: 1, 416>}, {transform_indices = @transform_7, window_bounds = array<i64: 4, 416>}]} {
    %c0 = arith.constant 0 : index
    %c0_0 = arith.constant 0 : index
    %0 = vector.load %arg1[%c0, %c0_0] : memref<4x64xbf16, #tpu.memory_space<vmem>>, vector<4x64xbf16>
    %c0_1 = arith.constant 0 : index
    %c0_2 = arith.constant 0 : index
    %1 = vector.load %arg2[%c0_1, %c0_2] : memref<64x512xbf16, #tpu.memory_space<vmem>>, vector<64x512xbf16>
    %cst = arith.constant dense<0.000000e+00> : vector<4x512xf32>
    %2 = tpu.matmul %0, %1, %cst {dimension_numbers = #tpu.dot_dimension_numbers<[1], [0], [0], [1], [0, 0, 1, 1], [], []>} : vector<4x64xbf16>, vector<64x512xbf16>, vector<4x512xf32> -> vector<4x512xf32>
    %c0_3 = arith.constant 0 : index
    %c0_4 = arith.constant 0 : index
    %3 = vector.load %arg3[%c0_3, %c0_4] : memref<1x512xf32, #tpu.memory_space<vmem>>, vector<1x512xf32>
    %4 = vector.broadcast %3 : vector<1x512xf32> to vector<4x512xf32>
    %5 = arith.addf %2, %4 : vector<4x512xf32>
    %cst_5 = arith.constant 0.000000e+00 : f32
    %6 = vector.broadcast %cst_5 : f32 to vector<4x512xf32>
    %7 = arith.maximumf %5, %6 : vector<4x512xf32>
    %8 = arith.truncf %7 : vector<4x512xf32> to vector<4x512xbf16>
    %c0_6 = arith.constant 0 : index
    %c0_7 = arith.constant 0 : index
    %9 = vector.load %arg4[%c0_6, %c0_7] : memref<512x256xbf16, #tpu.memory_space<vmem>>, vector<512x256xbf16>
    %cst_8 = arith.constant dense<0.000000e+00> : vector<4x256xf32>
    %10 = tpu.matmul %8, %9, %cst_8 {dimension_numbers = #tpu.dot_dimension_numbers<[1], [0], [0], [1], [0, 0, 1, 1], [], []>} : vector<4x512xbf16>, vector<512x256xbf16>, vector<4x256xf32> -> vector<4x256xf32>
    %c0_9 = arith.constant 0 : index
    %c0_10 = arith.constant 0 : index
    %11 = vector.load %arg5[%c0_9, %c0_10] : memref<1x256xf32, #tpu.memory_space<vmem>>, vector<1x256xf32>
    %12 = vector.broadcast %11 : vector<1x256xf32> to vector<4x256xf32>
    %13 = arith.addf %10, %12 : vector<4x256xf32>
    %cst_11 = arith.constant 0.000000e+00 : f32
    %14 = vector.broadcast %cst_11 : f32 to vector<4x256xf32>
    %15 = arith.cmpf oge, %13, %14 : vector<4x256xf32>
    %cst_12 = arith.constant 0.00999999977 : f32
    %16 = vector.broadcast %cst_12 : f32 to vector<4x256xf32>
    %17 = arith.mulf %16, %13 : vector<4x256xf32>
    %18 = arith.select %15, %13, %17 : vector<4x256xi1>, vector<4x256xf32>
    %19 = arith.truncf %18 : vector<4x256xf32> to vector<4x256xbf16>
    %c0_13 = arith.constant 0 : index
    %c0_14 = arith.constant 0 : index
    %20 = vector.load %arg6[%c0_13, %c0_14] : memref<256x416xbf16, #tpu.memory_space<vmem>>, vector<256x416xbf16>
    %cst_15 = arith.constant dense<0.000000e+00> : vector<4x416xf32>
    %21 = tpu.matmul %19, %20, %cst_15 {dimension_numbers = #tpu.dot_dimension_numbers<[1], [0], [0], [1], [0, 0, 1, 1], [], []>} : vector<4x256xbf16>, vector<256x416xbf16>, vector<4x416xf32> -> vector<4x416xf32>
    %c0_16 = arith.constant 0 : index
    %c0_17 = arith.constant 0 : index
    %22 = vector.load %arg7[%c0_16, %c0_17] : memref<1x416xf32, #tpu.memory_space<vmem>>, vector<1x416xf32>
    %23 = vector.broadcast %22 : vector<1x416xf32> to vector<4x416xf32>
    %24 = arith.addf %21, %23 : vector<4x416xf32>
    %c0_18 = arith.constant 0 : index
    %c0_19 = arith.constant 0 : index
    %25 = vector.load %arg8[%c0_18, %c0_19] : memref<4x416xf32, #tpu.memory_space<vmem>>, vector<4x416xf32>
    tpu.vector_store %arg8[%c0_18, %c0_19], %24 {strides = array<i32>} : memref<4x416xf32, #tpu.memory_space<vmem>>, vector<4x416xf32>,
    return
  }
  func.func @transform_0(%arg0: i32) -> (i32, i32) {
    %c0_i32 = arith.constant 0 : i32
    %c0_i32_0 = arith.constant 0 : i32
    return %arg0, %c0_i32 : i32, i32
  }
  func.func @transform_1(%arg0: i32) -> (i32, i32) {
    %c0_i32 = arith.constant 0 : i32
    %c0_i32_0 = arith.constant 0 : i32
    %c0_i32_1 = arith.constant 0 : i32
    return %c0_i32, %c0_i32_0 : i32, i32
  }
  func.func @transform_2(%arg0: i32) -> (i32, i32) {
    %c0_i32 = arith.constant 0 : i32
    %c0_i32_0 = arith.constant 0 : i32
    %c0_i32_1 = arith.constant 0 : i32
    return %c0_i32, %c0_i32_0 : i32, i32
  }
  func.func @transform_3(%arg0: i32) -> (i32, i32) {
    %c0_i32 = arith.constant 0 : i32
    %c0_i32_0 = arith.constant 0 : i32
    %c0_i32_1 = arith.constant 0 : i32
    return %c0_i32, %c0_i32_0 : i32, i32
  }
  func.func @transform_4(%arg0: i32) -> (i32, i32) {
    %c0_i32 = arith.constant 0 : i32
    %c0_i32_0 = arith.constant 0 : i32
    %c0_i32_1 = arith.constant 0 : i32
    return %c0_i32, %c0_i32_0 : i32, i32
  }
  func.func @transform_5(%arg0: i32) -> (i32, i32) {
    %c0_i32 = arith.constant 0 : i32
    %c0_i32_0 = arith.constant 0 : i32
    %c0_i32_1 = arith.constant 0 : i32
    return %c0_i32, %c0_i32_0 : i32, i32
  }
  func.func @transform_6(%arg0: i32) -> (i32, i32) {
    %c0_i32 = arith.constant 0 : i32
    %c0_i32_0 = arith.constant 0 : i32
    %c0_i32_1 = arith.constant 0 : i32
    return %c0_i32, %c0_i32_0 : i32, i32
  }
  func.func @transform_7(%arg0: i32) -> (i32, i32) {
    %c0_i32 = arith.constant 0 : i32
    %c0_i32_0 = arith.constant 0 : i32
    return %arg0, %c0_i32 : i32, i32
  }
}

module attributes {stable_mosaic.version = 11 : i64} {
  func.func @_head_kernel(%arg0: i32, %arg1: memref<4x64xbf16, #tpu.memory_space<vmem>>, %arg2: memref<64x512xbf16, #tpu.memory_space<vmem>>, %arg3: memref<1x512xf32, #tpu.memory_space<vmem>>, %arg4: memref<512x256xbf16, #tpu.memory_space<vmem>>, %arg5: memref<1x256xf32, #tpu.memory_space<vmem>>, %arg6: memref<256x416xbf16, #tpu.memory_space<vmem>>, %arg7: memref<1x416xf32, #tpu.memory_space<vmem>>, %arg8: memref<4x416xf32, #tpu.memory_space<vmem>>) attributes {dimension_semantics = [#tpu.dimension_semantics<parallel>], iteration_bounds = array<i64: 1>, scalar_prefetch = 0 : i64, scratch_operands = 0 : i64, tpu.core_type = #tpu.core_type<tc>, window_params = [{transform_indices = @transform_0, window_bounds = array<i64: 4, 64>}, {pipeline_mode = #tpu.pipeline_mode<synchronous>, transform_indices = @transform_1, window_bounds = array<i64: 64, 512>}, {pipeline_mode = #tpu.pipeline_mode<synchronous>, transform_indices = @transform_2, window_bounds = array<i64: 1, 512>}, {pipeline_mode = #tpu.pipeline_mode<synchronous>, transform_indices = @transform_3, window_bounds = array<i64: 512, 256>}, {pipeline_mode = #tpu.pipeline_mode<synchronous>, transform_indices = @transform_4, window_bounds = array<i64: 1, 256>}, {pipeline_mode = #tpu.pipeline_mode<synchronous>, transform_indices = @transform_5, window_bounds = array<i64: 256, 416>}, {pipeline_mode = #tpu.pipeline_mode<synchronous>, transform_indices = @transform_6, window_bounds = array<i64: 1, 416>}, {transform_indices = @transform_7, window_bounds = array<i64: 4, 416>}]} {
    %c0 = arith.constant 0 : index
    %c0_0 = arith.constant 0 : index
    %0 = vector.load %arg1[%c0, %c0_0] : memref<4x64xbf16, #tpu.memory_space<vmem>>, vector<4x64xbf16>
    %c0_1 = arith.constant 0 : index
    %c0_2 = arith.constant 0 : index
    %1 = vector.load %arg2[%c0_1, %c0_2] : memref<64x512xbf16, #tpu.memory_space<vmem>>, vector<64x512xbf16>
    %cst = arith.constant dense<0.000000e+00> : vector<4x512xf32>
    %2 = tpu.matmul %0, %1, %cst {dimension_numbers = #tpu.dot_dimension_numbers<[1], [0], [0], [1], [0, 0, 1, 1], [], []>} : vector<4x64xbf16>, vector<64x512xbf16>, vector<4x512xf32> -> vector<4x512xf32>
    %c0_3 = arith.constant 0 : index
    %c0_4 = arith.constant 0 : index
    %3 = vector.load %arg3[%c0_3, %c0_4] : memref<1x512xf32, #tpu.memory_space<vmem>>, vector<1x512xf32>
    %4 = vector.broadcast %3 : vector<1x512xf32> to vector<4x512xf32>
    %5 = arith.addf %2, %4 : vector<4x512xf32>
    %cst_5 = arith.constant 0.000000e+00 : f32
    %6 = vector.broadcast %cst_5 : f32 to vector<4x512xf32>
    %7 = arith.maximumf %5, %6 : vector<4x512xf32>
    %8 = arith.truncf %7 : vector<4x512xf32> to vector<4x512xbf16>
    %c0_6 = arith.constant 0 : index
    %c0_7 = arith.constant 0 : index
    %9 = vector.load %arg4[%c0_6, %c0_7] : memref<512x256xbf16, #tpu.memory_space<vmem>>, vector<512x256xbf16>
    %cst_8 = arith.constant dense<0.000000e+00> : vector<4x256xf32>
    %10 = tpu.matmul %8, %9, %cst_8 {dimension_numbers = #tpu.dot_dimension_numbers<[1], [0], [0], [1], [0, 0, 1, 1], [], []>} : vector<4x512xbf16>, vector<512x256xbf16>, vector<4x256xf32> -> vector<4x256xf32>
    %c0_9 = arith.constant 0 : index
    %c0_10 = arith.constant 0 : index
    %11 = vector.load %arg5[%c0_9, %c0_10] : memref<1x256xf32, #tpu.memory_space<vmem>>, vector<1x256xf32>
    %12 = vector.broadcast %11 : vector<1x256xf32> to vector<4x256xf32>
    %13 = arith.addf %10, %12 : vector<4x256xf32>
    %cst_11 = arith.constant 0.000000e+00 : f32
    %14 = vector.broadcast %cst_11 : f32 to vector<4x256xf32>
    %15 = arith.cmpf oge, %13, %14 : vector<4x256xf32>
    %cst_12 = arith.constant 0.00999999977 : f32
    %16 = vector.broadcast %cst_12 : f32 to vector<4x256xf32>
    %17 = arith.mulf %16, %13 : vector<4x256xf32>
    %18 = arith.select %15, %13, %17 : vector<4x256xi1>, vector<4x256xf32>
    %19 = arith.truncf %18 : vector<4x256xf32> to vector<4x256xbf16>
    %c0_13 = arith.constant 0 : index
    %c0_14 = arith.constant 0 : index
    %20 = vector.load %arg6[%c0_13, %c0_14] : memref<256x416xbf16, #tpu.memory_space<vmem>>, vector<256x416xbf16>
    %cst_15 = arith.constant dense<0.000000e+00> : vector<4x416xf32>
    %21 = tpu.matmul %19, %20, %cst_15 {dimension_numbers = #tpu.dot_dimension_numbers<[1], [0], [0], [1], [0, 0, 1, 1], [], []>} : vector<4x256xbf16>, vector<256x416xbf16>, vector<4x416xf32> -> vector<4x416xf32>
    %c0_16 = arith.constant 0 : index
    %c0_17 = arith.constant 0 : index
    %22 = vector.load %arg7[%c0_16, %c0_17] : memref<1x416xf32, #tpu.memory_space<vmem>>, vector<1x416xf32>
    %23 = vector.broadcast %22 : vector<1x416xf32> to vector<4x416xf32>
    %24 = arith.addf %21, %23 : vector<4x416xf32>
    %c0_18 = arith.constant 0 : index
    %c0_19 = arith.constant 0 : index
    %25 = vector.load %arg8[%c0_18, %c0_19] : memref<4x416xf32, #tpu.memory_space<vmem>>, vector<4x416xf32>
    tpu.vector_store %arg8[%c0_18, %c0_19], %24 {strides = array<i32>} : memref<4x416xf32, #tpu.memory_space<vmem>>, vector<4x416xf32>,
    return
  }
  func.func @transform_0(%arg0: i32) -> (i32, i32) {
    %c0_i32 = arith.constant 0 : i32
    %c0_i32_0 = arith.constant 0 : i32
    return %arg0, %c0_i32 : i32, i32
  }
  func.func @transform_1(%arg0: i32) -> (i32, i32) {
    %c0_i32 = arith.constant 0 : i32
    %c0_i32_0 = arith.constant 0 : i32
    %c0_i32_1 = arith.constant 0 : i32
    return %c0_i32, %c0_i32_0 : i32, i32
  }
  func.func @transform_2(%arg0: i32) -> (i32, i32) {
    %c0_i32 = arith.constant 0 : i32
    %c0_i32_0 = arith.constant 0 : i32
    %c0_i32_1 = arith.constant 0 : i32
    return %c0_i32, %c0_i32_0 : i32, i32
  }
  func.func @transform_3(%arg0: i32) -> (i32, i32) {
    %c0_i32 = arith.constant 0 : i32
    %c0_i32_0 = arith.constant 0 : i32
    %c0_i32_1 = arith.constant 0 : i32
    return %c0_i32, %c0_i32_0 : i32, i32
  }
  func.func @transform_4(%arg0: i32) -> (i32, i32) {
    %c0_i32 = arith.constant 0 : i32
    %c0_i32_0 = arith.constant 0 : i32
    %c0_i32_1 = arith.constant 0 : i32
    return %c0_i32, %c0_i32_0 : i32, i32
  }
  func.func @transform_5(%arg0: i32) -> (i32, i32) {
    %c0_i32 = arith.constant 0 : i32
    %c0_i32_0 = arith.constant 0 : i32
    %c0_i32_1 = arith.constant 0 : i32
    return %c0_i32, %c0_i32_0 : i32, i32
  }
  func.func @transform_6(%arg0: i32) -> (i32, i32) {
    %c0_i32 = arith.constant 0 : i32
    %c0_i32_0 = arith.constant 0 : i32
    %c0_i32_1 = arith.constant 0 : i32
    return %c0_i32, %c0_i32_0 : i32, i32
  }
  func.func @transform_7(%arg0: i32) -> (i32, i32) {
    %c0_i32 = arith.constant 0 : i32
    %c0_i32_0 = arith.constant 0 : i32
    return %arg0, %c0_i32 : i32, i32
  }
}

</mosaic_0001>

<bundles_post_ra>
// kernel: tpu_custom_call.1
= control target key start
LH: loop header
LB: loop body
LE: loop exit
PB: predicated region body
PF: predicated region fallthrough
CT: control target
= control target key end

     0   :  { %v1636_v2 = vmov 0   ;;  %vm147_vm0 = vcmask 523264   ;;  %s2171_s0 = inlined_call_operand.vmem [shape: bf16[4,64], index: 0, kind: input, shape index: {}]   ;;  %s2172_s1 = inlined_call_operand.vmem [shape: bf16[64,512], index: 1, kind: input, shape index: {}]   ;;  %s2173_s2 = inlined_call_operand.vmem [shape: f32[1,512], index: 2, kind: input, shape index: {}]   ;;  %s2174_s3 = inlined_call_operand.vmem [shape: bf16[512,256], index: 3, kind: input, shape index: {}]   ;;  %s2175_s4 = inlined_call_operand.vmem [shape: f32[1,256], index: 4, kind: input, shape index: {}]   ;;  %s2176_s5 = inlined_call_operand.vmem [shape: bf16[256,416], index: 5, kind: input, shape index: {}]   ;;  %s2177_s6 = inlined_call_operand.vmem [shape: f32[1,416], index: 6, kind: input, shape index: {}]   ;;  %s2178_s7 = inlined_call_operand.hbm [shape: f32[4,416], index: 7, kind: output, shape index: {}]  }
   0x1   :  { %v1396_v0 = vld [vmem:[%s2172_s1 + $0x4] ss:$16 sps:$4 sm:$0xff]   ;;  %v1398_v1 = vld [vmem:[%s2172_s1] ss:$16 sps:$4 sm:$0xff]   ;;  %183 = vmatprep.mubr.bf16.mxu0 %v1636_v2  ;;  %224 = vmatprep.mubr.bf16.mxu1 %v1636_v2  ;;  %v1408_v7 = vld [vmem:[%s2172_s1 + $0xc] ss:$16 sps:$4 sm:$0xff]  }
   0x2   :  { %151 = vmatprep.subr.bf16.mxu0 %v1396_v0  ;;  %v1399_v3 = vld [vmem:[%s2172_s1 + $0x24] ss:$16 sps:$4 sm:$0xff]   ;;  %v1401_v4 = vld [vmem:[%s2172_s1 + $0x20] ss:$16 sps:$4 sm:$0xff]   ;;  %v1410_v8 = vld [vmem:[%s2172_s1 + $0x8] ss:$16 sps:$4 sm:$0xff]   ;;  %192 = vmatprep.subr.bf16.mxu1 %v1408_v7 }
   0x3   :  { %152 = vmatpush1.bf16.msra.mxu0 %v1398_v1  ;;  %v1402_v5 = vld [vmem:[%s2172_s1 + $0x44] ss:$16 sps:$4 sm:$0xff]   ;;  %v1404_v6 = vld [vmem:[%s2172_s1 + $0x40] ss:$16 sps:$4 sm:$0xff]   ;;  %v1411_v9 = vld [vmem:[%s2172_s1 + $0x2c] ss:$16 sps:$4 sm:$0xff]   ;;  %193 = vmatpush1.bf16.msra.mxu1 %v1410_v8 }
   0x4   :  { %153 = vmatprep.subr.bf16.mxu0 %v1399_v3  ;;  %v1405_v10 = vld [vmem:[%s2172_s1 + $0x64] ss:$16 sps:$4 sm:$0xff]   ;;  %v1413_v11 = vld [vmem:[%s2172_s1 + $0x28] ss:$16 sps:$4 sm:$0xff]   ;;  %194 = vmatprep.subr.bf16.mxu1 %v1411_v9  ;;  %v1414_v12 = vld [vmem:[%s2172_s1 + $0x4c] ss:$16 sps:$4 sm:$0xff]  }
   0x5   :  { %v1407_v13 = vld [vmem:[%s2172_s1 + $0x60] ss:$16 sps:$4 sm:$0xff]   ;;  %v1422_v14 = vld [vmem:[%s2174_s3 + $0x4] ss:$8 sps:$4 sm:$0xff]   ;;  %v1416_v15 = vld [vmem:[%s2172_s1 + $0x48] ss:$16 sps:$4 sm:$0xff]  }
   0x6   :  { %v28_v16 = vld [vmem:[%s2171_s0] sm:$0x3]  ;;  %v1417_v17 = vld [vmem:[%s2172_s1 + $0x6c] ss:$16 sps:$4 sm:$0xff]   ;;  %v1419_v20 = vld [vmem:[%s2172_s1 + $0x68] ss:$16 sps:$4 sm:$0xff]  }
   0x7   :  { %154 = vmatpush1.bf16.msra.mxu0 %v1401_v4  ;;  %195 = vmatpush1.bf16.msra.mxu1 %v1413_v11  ;;  %v1420_v18 = vld [vmem:[%s2174_s3] ss:$8 sps:$4 sm:$0xff]   ;;  %v1425_v19 = vld [vmem:[%s2174_s3 + $0x14] ss:$8 sps:$4 sm:$0xff]   ;;  %v1423_v21 = vld [vmem:[%s2174_s3 + $0x10] ss:$8 sps:$4 sm:$0xff]  }
   0x8   :  { %155 = vmatprep.subr.bf16.mxu0 %v1402_v5  ;;  %196 = vmatprep.subr.bf16.mxu1 %v1414_v12  ;;  %v1428_v22 = vld [vmem:[%s2174_s3 + $0x24] ss:$8 sps:$4 sm:$0xff]   ;;  %v1426_v23 = vld [vmem:[%s2174_s3 + $0x20] ss:$8 sps:$4 sm:$0xff]   ;;  %v1431_v24 = vld [vmem:[%s2174_s3 + $0x34] ss:$8 sps:$4 sm:$0xff]  }
   0x9   :  { %v1429_v25 = vld [vmem:[%s2174_s3 + $0x30] ss:$8 sps:$4 sm:$0xff]   ;;  %v1434_v26 = vld [vmem:[%s2174_s3 + $0x44] ss:$8 sps:$4 sm:$0xff]   ;;  %v1432_v27 = vld [vmem:[%s2174_s3 + $0x40] ss:$8 sps:$4 sm:$0xff]  }
   0xa   :  { %v1437_v28 = vld [vmem:[%s2174_s3 + $0x54] ss:$8 sps:$4 sm:$0xff]   ;;  %v1435_v29 = vld [vmem:[%s2174_s3 + $0x50] ss:$8 sps:$4 sm:$0xff]   ;;  %v1440_v30 = vld [vmem:[%s2174_s3 + $0x64] ss:$8 sps:$4 sm:$0xff]  }
   0xb   :  { %156 = vmatpush1.bf16.msra.mxu0 %v1404_v6  ;;  %197 = vmatpush1.bf16.msra.mxu1 %v1416_v15  ;;  %v1438_v31 = vld [vmem:[%s2174_s3 + $0x60] ss:$8 sps:$4 sm:$0xff]   ;;  %v1443_v32 = vld [vmem:[%s2174_s3 + $0x74] ss:$8 sps:$4 sm:$0xff]   ;;  %v1441_v33 = vld [vmem:[%s2174_s3 + $0x70] ss:$8 sps:$4 sm:$0xff]  }
   0xc   :  { %157 = vmatprep.subr.bf16.mxu0 %v1405_v10  ;;  %198 = vmatprep.subr.bf16.mxu1 %v1417_v17  ;;  %v1446_v34 = vld [vmem:[%s2174_s3 + $0x84] ss:$8 sps:$4 sm:$0xff]   ;;  %v1444_v35 = vld [vmem:[%s2174_s3 + $0x80] ss:$8 sps:$4 sm:$0xff]   ;;  %v1449_v36 = vld [vmem:[%s2174_s3 + $0x94] ss:$8 sps:$4 sm:$0xff]  }
   0xd   :  { %v1447_v37 = vld [vmem:[%s2174_s3 + $0x90] ss:$8 sps:$4 sm:$0xff]   ;;  %v1452_v38 = vld [vmem:[%s2174_s3 + $0xa4] ss:$8 sps:$4 sm:$0xff]   ;;  %v1450_v39 = vld [vmem:[%s2174_s3 + $0xa0] ss:$8 sps:$4 sm:$0xff]  }
   0xe   :  { %v1455_v40 = vld [vmem:[%s2174_s3 + $0xb4] ss:$8 sps:$4 sm:$0xff]   ;;  %v1453_v41 = vld [vmem:[%s2174_s3 + $0xb0] ss:$8 sps:$4 sm:$0xff]   ;;  %v1458_v42 = vld [vmem:[%s2174_s3 + $0xc4] ss:$8 sps:$4 sm:$0xff]  }
   0xf   :  { %158 = vmatpush1.bf16.msra.mxu0 %v1407_v13  ;;  %199 = vmatpush1.bf16.msra.mxu1 %v1419_v20  ;;  %v1456_v43 = vld [vmem:[%s2174_s3 + $0xc0] ss:$8 sps:$4 sm:$0xff]  }
  0x10   :  { %637 = vmatprep.subr.bf16.mxu0 %v1422_v14 }
  0x12   :  { %1258 = vmatmul.mubr.msk.bf16.vlgmr.msra.gmra.mrb[0].mxu0 %vm147_vm0, %v28_v16  ;;  %1259 = vmatmul.mubr.msk.bf16.vlgmr.msra.gmra.mrb[0].mxu1 %vm147_vm0, %v28_v16 }
  0x13   :  { %638 = vmatpush1.bf16.msra.mxu0 %v1420_v18 }
  0x14   :  { %639 = vmatprep.subr.bf16.mxu0 %v1425_v19 }
  0x17   :  { %640 = vmatpush1.bf16.msra.mxu0 %v1423_v21 }
  0x18   :  { %641 = vmatprep.subr.bf16.mxu0 %v1428_v22 }
  0x1b   :  { %642 = vmatpush1.bf16.msra.mxu0 %v1426_v23 }
  0x1c   :  { %643 = vmatprep.subr.bf16.mxu0 %v1431_v24 }
  0x1f   :  { %644 = vmatpush1.bf16.msra.mxu0 %v1429_v25 }
  0x20   :  { %645 = vmatprep.subr.bf16.mxu0 %v1434_v26 }
  0x23   :  { %646 = vmatpush1.bf16.msra.mxu0 %v1432_v27 }
  0x24   :  { %647 = vmatprep.subr.bf16.mxu0 %v1437_v28 }
  0x27   :  { %648 = vmatpush1.bf16.msra.mxu0 %v1435_v29 }
  0x28   :  { %649 = vmatprep.subr.bf16.mxu0 %v1440_v30 }
  0x2b   :  { %650 = vmatpush1.bf16.msra.mxu0 %v1438_v31 }
  0x2c   :  { %651 = vmatprep.subr.bf16.mxu0 %v1443_v32 }
  0x2f   :  { %652 = vmatpush1.bf16.msra.mxu0 %v1441_v33 }
  0x30   :  { %653 = vmatprep.subr.bf16.mxu0 %v1446_v34 }
  0x33   :  { %654 = vmatpush1.bf16.msra.mxu0 %v1444_v35 }
  0x34   :  { %655 = vmatprep.subr.bf16.mxu0 %v1449_v36 }
  0x37   :  { %656 = vmatpush1.bf16.msra.mxu0 %v1447_v37 }
  0x38   :  { %657 = vmatprep.subr.bf16.mxu0 %v1452_v38 }
  0x3b   :  { %658 = vmatpush1.bf16.msra.mxu0 %v1450_v39 }
  0x3c   :  { %659 = vmatprep.subr.bf16.mxu0 %v1455_v40 }
  0x3f   :  { %660 = vmatpush1.bf16.msra.mxu0 %v1453_v41 }
  0x40   :  { %12 = vsyncpa [#allocation3], 0  ;;  %661 = vmatprep.subr.bf16.mxu0 %v1458_v42  ;;  %v1461_v44 = vld [vmem:[%s2174_s3 + $0xd4] ss:$8 sps:$4 sm:$0xff]   ;;  %v1459_v45 = vld [vmem:[%s2174_s3 + $0xd0] ss:$8 sps:$4 sm:$0xff]   ;;  %v47_v9 = vlaneseq }
  0x41   :  { %v1464_v46 = vld [vmem:[%s2174_s3 + $0xe4] ss:$8 sps:$4 sm:$0xff]   ;;  %v1462_v47 = vld [vmem:[%s2174_s3 + $0xe0] ss:$8 sps:$4 sm:$0xff]   ;;  %v1467_v48 = vld [vmem:[%s2174_s3 + $0xf4] ss:$8 sps:$4 sm:$0xff]  }
  0x42   :  { %v1465_v49 = vld [vmem:[%s2174_s3 + $0xf0] ss:$8 sps:$4 sm:$0xff]   ;;  %v1470_v50 = vld [vmem:[%s2174_s3 + $0x104] ss:$8 sps:$4 sm:$0xff]   ;;  %v1900_v12 = vshrl.u32 %v47_v9, 7  ;;  %vm1224_vm3 = vcmask 1043456  }
  0x43   :  { %662 = vmatpush1.bf16.msra.mxu0 %v1456_v43  ;;  %v1516_v51 = vld [vmem:[%s2176_s5] ss:$16 sps:$4 sm:$0xff]   ;;  %v1518_v52 = vld [vmem:[%s2176_s5 + $0x4] ss:$16 sps:$4 sm:$0xff]   ;;  %vm1225_vm4 = vcmask 261124  }
  0x44   :  { %663 = vmatprep.subr.bf16.mxu0 %v1461_v44  ;;  %v1521_v53 = vld [vmem:[%s2176_s5 + $0x24] ss:$16 sps:$4 sm:$0xff]   ;;  %1133 = vmatprep.subr.bf16.mxu1 %v1518_v52  ;;  %v1519_v54 = vld [vmem:[%s2176_s5 + $0x20] ss:$16 sps:$4 sm:$0xff]   ;;  %v1909_v15 = vsub.s32 0, %v1900_v12  ;;  %v1920_v18 = vsub.s32 1, %v1900_v12  ;;  %vm1226_vm5 = vmor %vm1225_vm4, %vm1224_vm3 }
  0x45   :  { %1134 = vmatpush1.bf16.msra.mxu1 %v1516_v51  ;;  %v1524_v55 = vld [vmem:[%s2176_s5 + $0x44] ss:$16 sps:$4 sm:$0xff]   ;;  %v1522_v56 = vld [vmem:[%s2176_s5 + $0x40] ss:$16 sps:$4 sm:$0xff]   ;;  %v61_v23 = vsub.s32 3, %v1900_v12 }
  0x46   :  { %1135 = vmatprep.subr.bf16.mxu1 %v1521_v53  ;;  %v1527_v57 = vld [vmem:[%s2176_s5 + $0x64] ss:$16 sps:$4 sm:$0xff]   ;;  %v1525_v58 = vld [vmem:[%s2176_s5 + $0x60] ss:$16 sps:$4 sm:$0xff]  }
  0x47   :  { %664 = vmatpush1.bf16.msra.mxu0 %v1459_v45  ;;  %v1530_v59 = vld [vmem:[%s2176_s5 + $0x84] ss:$16 sps:$4 sm:$0xff]   ;;  %v1528_v60 = vld [vmem:[%s2176_s5 + $0x80] ss:$16 sps:$4 sm:$0xff]  }
  0x48   :  { %665 = vmatprep.subr.bf16.mxu0 %v1464_v46  ;;  %v1533_v61 = vld [vmem:[%s2176_s5 + $0xa4] ss:$16 sps:$4 sm:$0xff]   ;;  %v1531_v62 = vld [vmem:[%s2176_s5 + $0xa0] ss:$16 sps:$4 sm:$0xff]  }
  0x49   :  { %1136 = vmatpush1.bf16.msra.mxu1 %v1519_v54  ;;  %v1536_v63 = vld [vmem:[%s2176_s5 + $0xc4] ss:$16 sps:$4 sm:$0xff]   ;;  %v1534_v0 = vld [vmem:[%s2176_s5 + $0xc0] ss:$16 sps:$4 sm:$0xff]  }
  0x4a   :  { %1137 = vmatprep.subr.bf16.mxu1 %v1524_v55  ;;  %v1539_v1 = vld [vmem:[%s2176_s5 + $0xe4] ss:$16 sps:$4 sm:$0xff]   ;;  %v1537_v2 = vld [vmem:[%s2176_s5 + $0xe0] ss:$16 sps:$4 sm:$0xff]  }
  0x4b   :  { %666 = vmatpush1.bf16.msra.mxu0 %v1462_v47  ;;  %v1542_v3 = vld [vmem:[%s2176_s5 + $0x104] ss:$16 sps:$4 sm:$0xff]   ;;  %v1540_v4 = vld [vmem:[%s2176_s5 + $0x100] ss:$16 sps:$4 sm:$0xff]  }
  0x4c   :  { %667 = vmatprep.subr.bf16.mxu0 %v1467_v48  ;;  %v1545_v5 = vld [vmem:[%s2176_s5 + $0x124] ss:$16 sps:$4 sm:$0xff]   ;;  %v1543_v6 = vld [vmem:[%s2176_s5 + $0x120] ss:$16 sps:$4 sm:$0xff]  }
  0x4d   :  { %1138 = vmatpush1.bf16.msra.mxu1 %v1522_v56  ;;  %v1548_v7 = vld [vmem:[%s2176_s5 + $0x144] ss:$16 sps:$4 sm:$0xff]   ;;  %v1546_v8 = vld [vmem:[%s2176_s5 + $0x140] ss:$16 sps:$4 sm:$0xff]  }
  0x4e   :  { %1139 = vmatprep.subr.bf16.mxu1 %v1527_v57  ;;  %v1551_v10 = vld [vmem:[%s2176_s5 + $0x164] ss:$16 sps:$4 sm:$0xff]   ;;  %v1549_v11 = vld [vmem:[%s2176_s5 + $0x160] ss:$16 sps:$4 sm:$0xff]  }
  0x4f   :  { %668 = vmatpush1.bf16.msra.mxu0 %v1465_v49  ;;  %v1554_v13 = vld [vmem:[%s2176_s5 + $0x184] ss:$16 sps:$4 sm:$0xff]   ;;  %v1552_v14 = vld [vmem:[%s2176_s5 + $0x180] ss:$16 sps:$4 sm:$0xff]  }
  0x50   :  { %678 = vmatprep.subr.bf16.mxu0 %v1470_v50  ;;  %v1557_v16 = vld [vmem:[%s2176_s5 + $0x1a4] ss:$16 sps:$4 sm:$0xff]   ;;  %v1917_v17 = vld [vmem:[%s2173_s2] sm:$0xf]  ;;  %v1471_v41 = vld [vmem:[%s2174_s3 + $0x110] ss:$8 sps:$4 sm:$0xff]  }
  0x51   :  { %1140 = vmatpush1.bf16.msra.mxu1 %v1525_v58  ;;  %v1555_v19 = vld [vmem:[%s2176_s5 + $0x1a0] ss:$16 sps:$4 sm:$0xff]   ;;  %v50_v20 = vrot.slane %v1917_v17, %v1909_v15  ;;  %v54_v21 = vrot.slane %v1917_v17, %v1920_v18  ;;  %v62_v31 = vrot.slane %v1917_v17, %v61_v23  ;;  %v1473_v36 = vld [vmem:[%s2174_s3 + $0x114] ss:$8 sps:$4 sm:$0xff]   ;;  %v1476_v43 = vld [vmem:[%s2174_s3 + $0x124] ss:$8 sps:$4 sm:$0xff]  }
  0x52   :  { %1141 = vmatprep.subr.bf16.mxu1 %v1530_v59  ;;  %v1468_v33 = vld [vmem:[%s2174_s3 + $0x100] ss:$8 sps:$4 sm:$0xff]   ;;  %v1479_v46 = vld [vmem:[%s2174_s3 + $0x134] ss:$8 sps:$4 sm:$0xff]   ;;  %v1477_v47 = vld [vmem:[%s2174_s3 + $0x130] ss:$8 sps:$4 sm:$0xff]  }
  0x53   :  { %v1474_v45 = vld [vmem:[%s2174_s3 + $0x120] ss:$8 sps:$4 sm:$0xff]   ;;  %v1482_v48 = vld [vmem:[%s2174_s3 + $0x144] ss:$8 sps:$4 sm:$0xff]   ;;  %v1485_v50 = vld [vmem:[%s2174_s3 + $0x154] ss:$8 sps:$4 sm:$0xff]  }
  0x54   :  { %v1480_v49 = vld [vmem:[%s2174_s3 + $0x140] ss:$8 sps:$4 sm:$0xff]   ;;  %v1483_v51 = vld [vmem:[%s2174_s3 + $0x150] ss:$8 sps:$4 sm:$0xff]   ;;  %v1488_v52 = vld [vmem:[%s2174_s3 + $0x164] ss:$8 sps:$4 sm:$0xff]  }
  0x55   :  { %1142 = vmatpush1.bf16.msra.mxu1 %v1528_v60  ;;  %v1486_v53 = vld [vmem:[%s2174_s3 + $0x160] ss:$8 sps:$4 sm:$0xff]   ;;  %v1491_v54 = vld [vmem:[%s2174_s3 + $0x174] ss:$8 sps:$4 sm:$0xff]   ;;  %v1489_v55 = vld [vmem:[%s2174_s3 + $0x170] ss:$8 sps:$4 sm:$0xff]  }
  0x56   :  { %1143 = vmatprep.subr.bf16.mxu1 %v1533_v61  ;;  %v1494_v56 = vld [vmem:[%s2174_s3 + $0x184] ss:$8 sps:$4 sm:$0xff]   ;;  %v1492_v57 = vld [vmem:[%s2174_s3 + $0x180] ss:$8 sps:$4 sm:$0xff]   ;;  %v1497_v58 = vld [vmem:[%s2174_s3 + $0x194] ss:$8 sps:$4 sm:$0xff]  }
  0x57   :  { %v1495_v59 = vld [vmem:[%s2174_s3 + $0x190] ss:$8 sps:$4 sm:$0xff]   ;;  %v1500_v60 = vld [vmem:[%s2174_s3 + $0x1a4] ss:$8 sps:$4 sm:$0xff]   ;;  %v1498_v61 = vld [vmem:[%s2174_s3 + $0x1a0] ss:$8 sps:$4 sm:$0xff]  }
  0x58   :  { %v1515_v9 = vld [vmem:[%s2174_s3 + $0x1f4] ss:$8 sps:$4 sm:$0xff]  }
  0x59   :  { %1144 = vmatpush1.bf16.msra.mxu1 %v1531_v62  ;;  %v1503_v62 = vld [vmem:[%s2174_s3 + $0x1b4] ss:$8 sps:$4 sm:$0xff]  }
  0x5a   :  { %1145 = vmatprep.subr.bf16.mxu1 %v1536_v63  ;;  %v1501_v63 = vld [vmem:[%s2174_s3 + $0x1b0] ss:$8 sps:$4 sm:$0xff]  }
  0x5d   :  { %1146 = vmatpush1.bf16.msra.mxu1 %v1534_v0  ;;  %v1506_v0 = vld [vmem:[%s2174_s3 + $0x1c4] ss:$8 sps:$4 sm:$0xff]  }
  0x5e   :  { %1147 = vmatprep.subr.bf16.mxu1 %v1539_v1  ;;  %v1504_v1 = vld [vmem:[%s2174_s3 + $0x1c0] ss:$8 sps:$4 sm:$0xff]  }
  0x61   :  { %1148 = vmatpush1.bf16.msra.mxu1 %v1537_v2  ;;  %v57_v2 = vsub.s32 2, %v1900_v12 }
  0x62   :  { %1149 = vmatprep.subr.bf16.mxu1 %v1542_v3  ;;  %v1509_v3 = vld [vmem:[%s2174_s3 + $0x1d4] ss:$8 sps:$4 sm:$0xff]  }
  0x65   :  { %1150 = vmatpush1.bf16.msra.mxu1 %v1540_v4  ;;  %v1507_v4 = vld [vmem:[%s2174_s3 + $0x1d0] ss:$8 sps:$4 sm:$0xff]  }
  0x66   :  { %1151 = vmatprep.subr.bf16.mxu1 %v1545_v5  ;;  %v58_v5 = vrot.slane %v1917_v17, %v57_v2  ;;  %v1563_v17 = vld [vmem:[%s2176_s5 + $0x1e4] ss:$16 sps:$4 sm:$0xff]  }
  0x69   :  { %1152 = vmatpush1.bf16.msra.mxu1 %v1543_v6  ;;  %v1512_v6 = vld [vmem:[%s2174_s3 + $0x1e4] ss:$8 sps:$4 sm:$0xff]  }
  0x6a   :  { %1153 = vmatprep.subr.bf16.mxu1 %v1548_v7  ;;  %v1510_v7 = vld [vmem:[%s2174_s3 + $0x1e0] ss:$8 sps:$4 sm:$0xff]  }
  0x6d   :  { %1154 = vmatpush1.bf16.msra.mxu1 %v1546_v8 }
  0x6e   :  { %1155 = vmatprep.subr.bf16.mxu1 %v1551_v10  ;;  %v1513_v10 = vld [vmem:[%s2174_s3 + $0x1f0] ss:$8 sps:$4 sm:$0xff]  }
  0x71   :  { %1156 = vmatpush1.bf16.msra.mxu1 %v1549_v11 }
  0x72   :  { %1157 = vmatprep.subr.bf16.mxu1 %v1554_v13 }
  0x75   :  { %1158 = vmatpush1.bf16.msra.mxu1 %v1552_v14  ;;  %v1560_v14 = vld [vmem:[%s2176_s5 + $0x1c4] ss:$16 sps:$4 sm:$0xff]  }
  0x76   :  { %1159 = vmatprep.subr.bf16.mxu1 %v1557_v16  ;;  %v1558_v16 = vld [vmem:[%s2176_s5 + $0x1c0] ss:$16 sps:$4 sm:$0xff]  }
  0x79   :  { %1160 = vmatpush1.bf16.msra.mxu1 %v1555_v19  ;;  %v1561_v19 = vld [vmem:[%s2176_s5 + $0x1e0] ss:$16 sps:$4 sm:$0xff]  }
  0x7a   :  { %1161 = vmatprep.subr.bf16.mxu1 %v1560_v14 }
  0x7d   :  { %1162 = vmatpush1.bf16.msra.mxu1 %v1558_v16 }
  0x7e   :  { %1163 = vmatprep.subr.bf16.mxu1 %v1563_v17 }
  0x81   :  { %1164 = vmatpush1.bf16.msra.mxu1 %v1561_v19 }
  0xe5   :  { %v185_v22 = vpop.f32.mrb[0].mxu0  ;;  %v1936_v34 = vpop.f32.mrb[0].mxu1 }
  0xe6   :  { %v186_v24 = vadd.f32 %v185_v22, %v50_v20  ;;  %v187_v25 = vpop.f32.mrb[1].mxu0  ;;  %v228_v37 = vpop.f32.mrb[1].mxu1  ;;  %v227_v8 = vadd.f32 %v1936_v34, %v58_v5  ;;  %v1566_v20 = vld [vmem:[%s2176_s5 + $0xc] ss:$16 sps:$4 sm:$0xff]   ;;  %v791_v5 = vld [vmem:[%s2177_s6] sm:$0xf] }
  0xe7   :  { %v188_v26 = vadd.f32 %v187_v25, %v54_v21  ;;  %v189_v27 = vpop.f32.mrb[2].mxu0  ;;  %v229_v38 = vadd.f32 %v228_v37, %v62_v31  ;;  %v230_v39 = vpop.f32.mrb[2].mxu1  ;;  %1174 = vmatprep.subr.bf16.mxu1 %v1566_v20  ;;  %v305_v21 = vld [vmem:[%s2175_s4] sm:$0x3]  ;;  %v804_v17 = vrot.slane %v791_v5, %v57_v2  ;;  %v808_v19 = vrot.slane %v791_v5, %v61_v23 }
  0xe8   :  { %v233_v28 = vmax.f32 %v186_v24, 0.0  ;;  %v190_v29 = vpop.f32.mrb[3].mxu0  ;;  %v231_v40 = vpop.f32.mrb[3].mxu1  ;;  %v235_v11 = vmax.f32 %v227_v8, 0.0  ;;  %v310_v22 = vrot.slane %v305_v21, %v1909_v15  ;;  %v314_v24 = vrot.slane %v305_v21, %v1920_v18  ;;  %v1567_v39 = vld [vmem:[%s2176_s5 + $0x28] ss:$16 sps:$4 sm:$0xff]  }
  0xe9   :  { %v234_v30 = vmax.f32 %v188_v26, 0.0  ;;  %v236_v42 = vmax.f32 %v229_v38, 0.0  ;;  %v1569_v38 = vld [vmem:[%s2176_s5 + $0x2c] ss:$16 sps:$4 sm:$0xff]  }
  0xea   :  { %v237_v35 = vpack.c.bf16 %v233_v28, %v233_v28  ;;  %v239_v13 = vpack.c.bf16 %v235_v11, %v235_v11  ;;  %v1572_v40 = vld [vmem:[%s2176_s5 + $0x4c] ss:$16 sps:$4 sm:$0xff]  }
  0xeb   :  { %v238_v32 = vpack.c.bf16 %v234_v30, %v234_v30  ;;  %v240_v44 = vpack.c.bf16 %v236_v42, %v236_v42  ;;  %v1575_v42 = vld [vmem:[%s2176_s5 + $0x6c] ss:$16 sps:$4 sm:$0xff]  }
  0xed   :  { %669 = vmatprep.mubr.bf16.mxu0 %v238_v32 }
  0xee   :  { %670 = vmatmul.mubr.bf16.vlgmr.msra.gmra.mrb[4].mxu0 %v237_v35 }
  0xef   :  { %679 = vmatpush1.bf16.msra.mxu0 %v1468_v33  ;;  %710 = vmatprep.mubr.bf16.mxu0 %v240_v44  ;;  %v1578_v44 = vld [vmem:[%s2176_s5 + $0x8c] ss:$16 sps:$4 sm:$0xff]  }
  0xf0   :  { %680 = vmatprep.subr.bf16.mxu0 %v1473_v36  ;;  %v1564_v36 = vld [vmem:[%s2176_s5 + $0x8] ss:$16 sps:$4 sm:$0xff]  }
  0xf3   :  { %681 = vmatpush1.bf16.msra.mxu0 %v1471_v41  ;;  %v1570_v41 = vld [vmem:[%s2176_s5 + $0x48] ss:$16 sps:$4 sm:$0xff]  }
  0xf4   :  { %682 = vmatprep.subr.bf16.mxu0 %v1476_v43  ;;  %v1573_v43 = vld [vmem:[%s2176_s5 + $0x68] ss:$16 sps:$4 sm:$0xff]  }
  0xf7   :  { %683 = vmatpush1.bf16.msra.mxu0 %v1474_v45  ;;  %v1576_v45 = vld [vmem:[%s2176_s5 + $0x88] ss:$16 sps:$4 sm:$0xff]  }
  0xf8   :  { %684 = vmatprep.subr.bf16.mxu0 %v1479_v46  ;;  %v1581_v46 = vld [vmem:[%s2176_s5 + $0xac] ss:$16 sps:$4 sm:$0xff]  }
  0xfb   :  { %685 = vmatpush1.bf16.msra.mxu0 %v1477_v47  ;;  %v1579_v47 = vld [vmem:[%s2176_s5 + $0xa8] ss:$16 sps:$4 sm:$0xff]  }
  0xfc   :  { %686 = vmatprep.subr.bf16.mxu0 %v1482_v48  ;;  %v1584_v48 = vld [vmem:[%s2176_s5 + $0xcc] ss:$16 sps:$4 sm:$0xff]  }
  0xff   :  { %687 = vmatpush1.bf16.msra.mxu0 %v1480_v49  ;;  %v1582_v49 = vld [vmem:[%s2176_s5 + $0xc8] ss:$16 sps:$4 sm:$0xff]  }
 0x100   :  { %688 = vmatprep.subr.bf16.mxu0 %v1485_v50  ;;  %v1587_v50 = vld [vmem:[%s2176_s5 + $0xec] ss:$16 sps:$4 sm:$0xff]  }
 0x103   :  { %689 = vmatpush1.bf16.msra.mxu0 %v1483_v51  ;;  %v1585_v51 = vld [vmem:[%s2176_s5 + $0xe8] ss:$16 sps:$4 sm:$0xff]  }
 0x104   :  { %690 = vmatprep.subr.bf16.mxu0 %v1488_v52  ;;  %v1590_v52 = vld [vmem:[%s2176_s5 + $0x10c] ss:$16 sps:$4 sm:$0xff]  }
 0x107   :  { %691 = vmatpush1.bf16.msra.mxu0 %v1486_v53  ;;  %v1588_v53 = vld [vmem:[%s2176_s5 + $0x108] ss:$16 sps:$4 sm:$0xff]  }
 0x108   :  { %692 = vmatprep.subr.bf16.mxu0 %v1491_v54  ;;  %v1593_v54 = vld [vmem:[%s2176_s5 + $0x12c] ss:$16 sps:$4 sm:$0xff]  }
 0x10b   :  { %693 = vmatpush1.bf16.msra.mxu0 %v1489_v55  ;;  %v1591_v55 = vld [vmem:[%s2176_s5 + $0x128] ss:$16 sps:$4 sm:$0xff]  }
 0x10c   :  { %694 = vmatprep.subr.bf16.mxu0 %v1494_v56  ;;  %v1596_v56 = vld [vmem:[%s2176_s5 + $0x14c] ss:$16 sps:$4 sm:$0xff]  }
 0x10f   :  { %695 = vmatpush1.bf16.msra.mxu0 %v1492_v57  ;;  %v1594_v57 = vld [vmem:[%s2176_s5 + $0x148] ss:$16 sps:$4 sm:$0xff]  }
 0x110   :  { %696 = vmatprep.subr.bf16.mxu0 %v1497_v58  ;;  %v1599_v58 = vld [vmem:[%s2176_s5 + $0x16c] ss:$16 sps:$4 sm:$0xff]  }
 0x113   :  { %697 = vmatpush1.bf16.msra.mxu0 %v1495_v59  ;;  %v1597_v59 = vld [vmem:[%s2176_s5 + $0x168] ss:$16 sps:$4 sm:$0xff]  }
 0x114   :  { %698 = vmatprep.subr.bf16.mxu0 %v1500_v60  ;;  %v1602_v60 = vld [vmem:[%s2176_s5 + $0x18c] ss:$16 sps:$4 sm:$0xff]  }
 0x117   :  { %699 = vmatpush1.bf16.msra.mxu0 %v1498_v61  ;;  %v1600_v61 = vld [vmem:[%s2176_s5 + $0x188] ss:$16 sps:$4 sm:$0xff]  }
 0x118   :  { %700 = vmatprep.subr.bf16.mxu0 %v1503_v62  ;;  %v1605_v62 = vld [vmem:[%s2176_s5 + $0x1ac] ss:$16 sps:$4 sm:$0xff]  }
 0x11b   :  { %701 = vmatpush1.bf16.msra.mxu0 %v1501_v63  ;;  %v1603_v63 = vld [vmem:[%s2176_s5 + $0x1a8] ss:$16 sps:$4 sm:$0xff]  }
 0x11c   :  { %702 = vmatprep.subr.bf16.mxu0 %v1506_v0  ;;  %v1608_v0 = vld [vmem:[%s2176_s5 + $0x1cc] ss:$16 sps:$4 sm:$0xff]  }
 0x11f   :  { %703 = vmatpush1.bf16.msra.mxu0 %v1504_v1  ;;  %v1606_v1 = vld [vmem:[%s2176_s5 + $0x1c8] ss:$16 sps:$4 sm:$0xff]  }
 0x120   :  { %704 = vmatprep.subr.bf16.mxu0 %v1509_v3  ;;  %v1611_v3 = vld [vmem:[%s2176_s5 + $0x1ec] ss:$16 sps:$4 sm:$0xff]  }
 0x123   :  { %705 = vmatpush1.bf16.msra.mxu0 %v1507_v4  ;;  %v1609_v4 = vld [vmem:[%s2176_s5 + $0x1e8] ss:$16 sps:$4 sm:$0xff]   ;;  %s1637_s5 = smov [#allocation2]  }
 0x124   :  { %706 = vmatprep.subr.bf16.mxu0 %v1512_v6  ;;  %v796_v6 = vrot.slane %v791_v5, %v1909_v15  ;;  %s1234_s6 = sshll.u32 %s1637_s5, 4  ;;  %s1235_s6 = int_to_ptr.vmem [resolvable:$true] %s1234_s6 }
 0x125   :  { %s1612_s12 = scalar_lea.vmem %s1235_s6, 256  ;;  %p1617_p1 = scmp.lt.s32.totalorder %s1235_s6, %s1235_s6 }
 0x126   :  { %p1613_p0 = scmp.ne.s32.totalorder %s1235_s6, %s1612_s12  ;;  %p1618_p2 = scmp.lt.s32.totalorder %s1612_s12, %s1612_s12 }
 0x127   :  { %707 = vmatpush1.bf16.msra.mxu0 %v1510_v7  ;;  %v800_v7 = vrot.slane %v791_v5, %v1920_v18 }
 0x128   :  { %708 = vmatprep.subr.bf16.mxu0 %v1515_v9  ;;  %p1619_p3 = por %p1618_p2, %p1617_p1 }
 0x12a   :  { %p1620_p4 = pnand %p1619_p3, %p1613_p0 }
 0x12b   :  { %709 = vmatpush1.bf16.msra.mxu0 %v1513_v10 }
 0x12e   :  { %711 = vmatmul.mubr.bf16.vlgmr.msra.gmra.mrb[4].mxu0 %v239_v13 }
 0x201   :  { %v712_v25 = vpop.f32.mrb[4].mxu0 }
 0x202   :  { %v1388_v26 = vadd.f32 %v712_v25, %v310_v22  ;;  %v714_v27 = vpop.f32.mrb[5].mxu0 }
 0x203   :  { %v1389_v28 = vadd.f32 %v714_v27, %v314_v24  ;;  %v716_v29 = vpop.f32.mrb[6].mxu0 }
 0x204   :  { %vm719_vm1 = vcmp.ge.f32.partialorder %v1388_v26, 0.0  ;;  %v721_v30 = vmul.f32 0.01, %v1388_v26  ;;  %v717_v31 = vpop.f32.mrb[7].mxu0 }
 0x205   :  { %vm720_vm2 = vcmp.ge.f32.partialorder %v1389_v28, 0.0  ;;  %v722_v32 = vmul.f32 0.01, %v1389_v28 }
 0x206   :  { %v723_v33 = vsel %vm719_vm1, %v1388_v26, %v721_v30 }
 0x207   :  { %v724_v34 = vsel %vm720_vm2, %v1389_v28, %v722_v32  ;;  %v2056_v37 = vpack.c.bf16 %v723_v33, %v723_v33 }
 0x208   :  { %v726_v35 = vpack.c.bf16 %v724_v34, %v724_v34 }
 0x20a   :  { %1165 = vmatprep.mubr.bf16.mxu1 %v726_v35 }
 0x20b   :  { %1166 = vmatmul.mubr.bf16.vlgmr.msra.gmra.mrb[4].mxu1 %v2056_v37 }
 0x20c   :  { %1175 = vmatpush1.bf16.msra.mxu1 %v1564_v36  ;;  %1206 = vmatprep.mubr.bf16.mxu1 %v726_v35 }
 0x20d   :  { %1176 = vmatprep.subr.bf16.mxu1 %v1569_v38 }
 0x210   :  { %1177 = vmatpush1.bf16.msra.mxu1 %v1567_v39 }
 0x211   :  { %1178 = vmatprep.subr.bf16.mxu1 %v1572_v40 }
 0x214   :  { %1179 = vmatpush1.bf16.msra.mxu1 %v1570_v41 }
 0x215   :  { %1180 = vmatprep.subr.bf16.mxu1 %v1575_v42 }
 0x218   :  { %1181 = vmatpush1.bf16.msra.mxu1 %v1573_v43 }
 0x219   :  { %1182 = vmatprep.subr.bf16.mxu1 %v1578_v44 }
 0x21c   :  { %1183 = vmatpush1.bf16.msra.mxu1 %v1576_v45 }
 0x21d   :  { %1184 = vmatprep.subr.bf16.mxu1 %v1581_v46 }
 0x220   :  { %1185 = vmatpush1.bf16.msra.mxu1 %v1579_v47 }
 0x221   :  { %1186 = vmatprep.subr.bf16.mxu1 %v1584_v48 }
 0x224   :  { %1187 = vmatpush1.bf16.msra.mxu1 %v1582_v49 }
 0x225   :  { %1188 = vmatprep.subr.bf16.mxu1 %v1587_v50 }
 0x228   :  { %1189 = vmatpush1.bf16.msra.mxu1 %v1585_v51 }
 0x229   :  { %1190 = vmatprep.subr.bf16.mxu1 %v1590_v52 }
 0x22c   :  { %1191 = vmatpush1.bf16.msra.mxu1 %v1588_v53 }
 0x22d   :  { %1192 = vmatprep.subr.bf16.mxu1 %v1593_v54 }
 0x230   :  { %1193 = vmatpush1.bf16.msra.mxu1 %v1591_v55 }
 0x231   :  { %1194 = vmatprep.subr.bf16.mxu1 %v1596_v56 }
 0x234   :  { %1195 = vmatpush1.bf16.msra.mxu1 %v1594_v57 }
 0x235   :  { %1196 = vmatprep.subr.bf16.mxu1 %v1599_v58 }
 0x238   :  { %1197 = vmatpush1.bf16.msra.mxu1 %v1597_v59 }
 0x239   :  { %1198 = vmatprep.subr.bf16.mxu1 %v1602_v60 }
 0x23c   :  { %1199 = vmatpush1.bf16.msra.mxu1 %v1600_v61 }
 0x23d   :  { %1200 = vmatprep.subr.bf16.mxu1 %v1605_v62 }
 0x240   :  { %1201 = vmatpush1.bf16.msra.mxu1 %v1603_v63 }
 0x241   :  { %1202 = vmatprep.subr.bf16.mxu1 %v1608_v0 }
 0x244   :  { %1203 = vmatpush1.bf16.msra.mxu1 %v1606_v1 }
 0x245   :  { %1204 = vmatprep.subr.bf16.mxu1 %v1611_v3 }
 0x248   :  { %1205 = vmatpush1.bf16.msra.mxu1 %v1609_v4 }
 0x24b   :  { %1207 = vmatmul.mubr.bf16.vlgmr.msra.gmra.mrb[8].mxu1 %v2056_v37 }
 0x2de   :  { %v1167_v8 = vpop.f32.mrb[4].mxu1 }
 0x2df   :  { %v1168_v9 = vadd.f32 %v1167_v8, %v796_v6  ;;  %v1169_v10 = vpop.f32.mrb[5].mxu1 }
 0x2e0   :  { %v1170_v11 = vadd.f32 %v1169_v10, %v800_v7  ;;  %v1171_v13 = vpop.f32.mrb[6].mxu1 }
 0x2e1   :  { %v1172_v14 = vpop.f32.mrb[7].mxu1 }
 0x2e2   :  { %v1219_v16 = vcombine.low %v1168_v9, %v1170_v11 }
 0x2e4   :  { %1223 = vst [vmem:[#allocation2] sm:$0xff] %v1219_v16 }
 0x31e   :  { %v1208_v20 = vpop.f32.mrb[8].mxu1 }
 0x31f   :  { %v1209_v15 = vadd.f32 %v1208_v20, %v804_v17  ;;  %v1210_v21 = vpop.f32.mrb[9].mxu1 }
 0x320   :  { %v1211_v18 = vadd.f32 %v1210_v21, %v808_v19  ;;  %v1212_v22 = vpop.f32.mrb[10].mxu1 }
 0x321   :  { %v1213_v24 = vpop.f32.mrb[11].mxu1 }
 0x322   :  { %v1220_v25 = vcombine.low %v1209_v15, %v1211_v18 }
 0x324   :  { %1227 = vst.msk [vmem:[#allocation2 + $0x8] sm:$0xff] %vm1226_vm5, %v1220_v25 }
 0x325   :  { %1623 = shalt.err (!%p1620_p4)
}
 0x326   :  { %s1624_s15 = scalar_lea.hbm %s2178_s7, 256 }
 0x327   :  { %p1625_p5 = scmp.ne.s32.totalorder %s2178_s7, %s1624_s15  ;;  %p1628_p6 = scmp.lt.u32.totalorder %s1624_s15, %s2178_s7 }
 0x329   :  { %p1630_p7 = pnand %p1628_p6, %p1625_p5 }
 0x32b   :  { %1633 = shalt.err (!%p1630_p7)
}
 0x32c   :  { %1237 = dma.vmem_to_hbm [thread:$0]  %s1235_s6, 256, %s2178_s7, [#allocation3]  }
 0x32d   :  { %1634 = dma.done.wait [#allocation3], 256  }
 0x32e   :  { %1635 = vsyncadd [#allocation3], 4294967040 }
 0x32f   :  { %1241 = vsyncpa [#allocation3], 1 }

// kernel: tpu_custom_call.1
= control target key start
LH: loop header
LB: loop body
LE: loop exit
PB: predicated region body
PF: predicated region fallthrough
CT: control target
= control target key end

     0   :  { %v1636_v2 = vmov 0   ;;  %vm147_vm0 = vcmask 523264   ;;  %s2171_s0 = inlined_call_operand.vmem [shape: bf16[4,64], index: 0, kind: input, shape index: {}]   ;;  %s2172_s1 = inlined_call_operand.vmem [shape: bf16[64,512], index: 1, kind: input, shape index: {}]   ;;  %s2173_s2 = inlined_call_operand.vmem [shape: f32[1,512], index: 2, kind: input, shape index: {}]   ;;  %s2174_s3 = inlined_call_operand.vmem [shape: bf16[512,256], index: 3, kind: input, shape index: {}]   ;;  %s2175_s4 = inlined_call_operand.vmem [shape: f32[1,256], index: 4, kind: input, shape index: {}]   ;;  %s2176_s5 = inlined_call_operand.vmem [shape: bf16[256,416], index: 5, kind: input, shape index: {}]   ;;  %s2177_s6 = inlined_call_operand.vmem [shape: f32[1,416], index: 6, kind: input, shape index: {}]   ;;  %s2178_s7 = inlined_call_operand.hbm [shape: f32[4,416], index: 7, kind: output, shape index: {}]  }
   0x1   :  { %v1396_v0 = vld [vmem:[%s2172_s1 + $0x4] ss:$16 sps:$4 sm:$0xff]   ;;  %v1398_v1 = vld [vmem:[%s2172_s1] ss:$16 sps:$4 sm:$0xff]   ;;  %183 = vmatprep.mubr.bf16.mxu0 %v1636_v2  ;;  %224 = vmatprep.mubr.bf16.mxu1 %v1636_v2  ;;  %v1408_v7 = vld [vmem:[%s2172_s1 + $0xc] ss:$16 sps:$4 sm:$0xff]  }
   0x2   :  { %151 = vmatprep.subr.bf16.mxu0 %v1396_v0  ;;  %v1399_v3 = vld [vmem:[%s2172_s1 + $0x24] ss:$16 sps:$4 sm:$0xff]   ;;  %v1401_v4 = vld [vmem:[%s2172_s1 + $0x20] ss:$16 sps:$4 sm:$0xff]   ;;  %v1410_v8 = vld [vmem:[%s2172_s1 + $0x8] ss:$16 sps:$4 sm:$0xff]   ;;  %192 = vmatprep.subr.bf16.mxu1 %v1408_v7 }
   0x3   :  { %152 = vmatpush1.bf16.msra.mxu0 %v1398_v1  ;;  %v1402_v5 = vld [vmem:[%s2172_s1 + $0x44] ss:$16 sps:$4 sm:$0xff]   ;;  %v1404_v6 = vld [vmem:[%s2172_s1 + $0x40] ss:$16 sps:$4 sm:$0xff]   ;;  %v1411_v9 = vld [vmem:[%s2172_s1 + $0x2c] ss:$16 sps:$4 sm:$0xff]   ;;  %193 = vmatpush1.bf16.msra.mxu1 %v1410_v8 }
   0x4   :  { %153 = vmatprep.subr.bf16.mxu0 %v1399_v3  ;;  %v1405_v10 = vld [vmem:[%s2172_s1 + $0x64] ss:$16 sps:$4 sm:$0xff]   ;;  %v1413_v11 = vld [vmem:[%s2172_s1 + $0x28] ss:$16 sps:$4 sm:$0xff]   ;;  %194 = vmatprep.subr.bf16.mxu1 %v1411_v9  ;;  %v1414_v12 = vld [vmem:[%s2172_s1 + $0x4c] ss:$16 sps:$4 sm:$0xff]  }
   0x5   :  { %v1407_v13 = vld [vmem:[%s2172_s1 + $0x60] ss:$16 sps:$4 sm:$0xff]   ;;  %v1422_v14 = vld [vmem:[%s2174_s3 + $0x4] ss:$8 sps:$4 sm:$0xff]   ;;  %v1416_v15 = vld [vmem:[%s2172_s1 + $0x48] ss:$16 sps:$4 sm:$0xff]  }
   0x6   :  { %v28_v16 = vld [vmem:[%s2171_s0] sm:$0x3]  ;;  %v1417_v17 = vld [vmem:[%s2172_s1 + $0x6c] ss:$16 sps:$4 sm:$0xff]   ;;  %v1419_v20 = vld [vmem:[%s2172_s1 + $0x68] ss:$16 sps:$4 sm:$0xff]  }
   0x7   :  { %154 = vmatpush1.bf16.msra.mxu0 %v1401_v4  ;;  %195 = vmatpush1.bf16.msra.mxu1 %v1413_v11  ;;  %v1420_v18 = vld [vmem:[%s2174_s3] ss:$8 sps:$4 sm:$0xff]   ;;  %v1425_v19 = vld [vmem:[%s2174_s3 + $0x14] ss:$8 sps:$4 sm:$0xff]   ;;  %v1423_v21 = vld [vmem:[%s2174_s3 + $0x10] ss:$8 sps:$4 sm:$0xff]  }
   0x8   :  { %155 = vmatprep.subr.bf16.mxu0 %v1402_v5  ;;  %196 = vmatprep.subr.bf16.mxu1 %v1414_v12  ;;  %v1428_v22 = vld [vmem:[%s2174_s3 + $0x24] ss:$8 sps:$4 sm:$0xff]   ;;  %v1426_v23 = vld [vmem:[%s2174_s3 + $0x20] ss:$8 sps:$4 sm:$0xff]   ;;  %v1431_v24 = vld [vmem:[%s2174_s3 + $0x34] ss:$8 sps:$4 sm:$0xff]  }
   0x9   :  { %v1429_v25 = vld [vmem:[%s2174_s3 + $0x30] ss:$8 sps:$4 sm:$0xff]   ;;  %v1434_v26 = vld [vmem:[%s2174_s3 + $0x44] ss:$8 sps:$4 sm:$0xff]   ;;  %v1432_v27 = vld [vmem:[%s2174_s3 + $0x40] ss:$8 sps:$4 sm:$0xff]  }
   0xa   :  { %v1437_v28 = vld [vmem:[%s2174_s3 + $0x54] ss:$8 sps:$4 sm:$0xff]   ;;  %v1435_v29 = vld [vmem:[%s2174_s3 + $0x50] ss:$8 sps:$4 sm:$0xff]   ;;  %v1440_v30 = vld [vmem:[%s2174_s3 + $0x64] ss:$8 sps:$4 sm:$0xff]  }
   0xb   :  { %156 = vmatpush1.bf16.msra.mxu0 %v1404_v6  ;;  %197 = vmatpush1.bf16.msra.mxu1 %v1416_v15  ;;  %v1438_v31 = vld [vmem:[%s2174_s3 + $0x60] ss:$8 sps:$4 sm:$0xff]   ;;  %v1443_v32 = vld [vmem:[%s2174_s3 + $0x74] ss:$8 sps:$4 sm:$0xff]   ;;  %v1441_v33 = vld [vmem:[%s2174_s3 + $0x70] ss:$8 sps:$4 sm:$0xff]  }
   0xc   :  { %157 = vmatprep.subr.bf16.mxu0 %v1405_v10  ;;  %198 = vmatprep.subr.bf16.mxu1 %v1417_v17  ;;  %v1446_v34 = vld [vmem:[%s2174_s3 + $0x84] ss:$8 sps:$4 sm:$0xff]   ;;  %v1444_v35 = vld [vmem:[%s2174_s3 + $0x80] ss:$8 sps:$4 sm:$0xff]   ;;  %v1449_v36 = vld [vmem:[%s2174_s3 + $0x94] ss:$8 sps:$4 sm:$0xff]  }
   0xd   :  { %v1447_v37 = vld [vmem:[%s2174_s3 + $0x90] ss:$8 sps:$4 sm:$0xff]   ;;  %v1452_v38 = vld [vmem:[%s2174_s3 + $0xa4] ss:$8 sps:$4 sm:$0xff]   ;;  %v1450_v39 = vld [vmem:[%s2174_s3 + $0xa0] ss:$8 sps:$4 sm:$0xff]  }
   0xe   :  { %v1455_v40 = vld [vmem:[%s2174_s3 + $0xb4] ss:$8 sps:$4 sm:$0xff]   ;;  %v1453_v41 = vld [vmem:[%s2174_s3 + $0xb0] ss:$8 sps:$4 sm:$0xff]   ;;  %v1458_v42 = vld [vmem:[%s2174_s3 + $0xc4] ss:$8 sps:$4 sm:$0xff]  }
   0xf   :  { %158 = vmatpush1.bf16.msra.mxu0 %v1407_v13  ;;  %199 = vmatpush1.bf16.msra.mxu1 %v1419_v20  ;;  %v1456_v43 = vld [vmem:[%s2174_s3 + $0xc0] ss:$8 sps:$4 sm:$0xff]  }
  0x10   :  { %637 = vmatprep.subr.bf16.mxu0 %v1422_v14 }
  0x12   :  { %1258 = vmatmul.mubr.msk.bf16.vlgmr.msra.gmra.mrb[0].mxu0 %vm147_vm0, %v28_v16  ;;  %1259 = vmatmul.mubr.msk.bf16.vlgmr.msra.gmra.mrb[0].mxu1 %vm147_vm0, %v28_v16 }
  0x13   :  { %638 = vmatpush1.bf16.msra.mxu0 %v1420_v18 }
  0x14   :  { %639 = vmatprep.subr.bf16.mxu0 %v1425_v19 }
  0x17   :  { %640 = vmatpush1.bf16.msra.mxu0 %v1423_v21 }
  0x18   :  { %641 = vmatprep.subr.bf16.mxu0 %v1428_v22 }
  0x1b   :  { %642 = vmatpush1.bf16.msra.mxu0 %v1426_v23 }
  0x1c   :  { %643 = vmatprep.subr.bf16.mxu0 %v1431_v24 }
  0x1f   :  { %644 = vmatpush1.bf16.msra.mxu0 %v1429_v25 }
  0x20   :  { %645 = vmatprep.subr.bf16.mxu0 %v1434_v26 }
  0x23   :  { %646 = vmatpush1.bf16.msra.mxu0 %v1432_v27 }
  0x24   :  { %647 = vmatprep.subr.bf16.mxu0 %v1437_v28 }
  0x27   :  { %648 = vmatpush1.bf16.msra.mxu0 %v1435_v29 }
  0x28   :  { %649 = vmatprep.subr.bf16.mxu0 %v1440_v30 }
  0x2b   :  { %650 = vmatpush1.bf16.msra.mxu0 %v1438_v31 }
  0x2c   :  { %651 = vmatprep.subr.bf16.mxu0 %v1443_v32 }
  0x2f   :  { %652 = vmatpush1.bf16.msra.mxu0 %v1441_v33 }
  0x30   :  { %653 = vmatprep.subr.bf16.mxu0 %v1446_v34 }
  0x33   :  { %654 = vmatpush1.bf16.msra.mxu0 %v1444_v35 }
  0x34   :  { %655 = vmatprep.subr.bf16.mxu0 %v1449_v36 }
  0x37   :  { %656 = vmatpush1.bf16.msra.mxu0 %v1447_v37 }
  0x38   :  { %657 = vmatprep.subr.bf16.mxu0 %v1452_v38 }
  0x3b   :  { %658 = vmatpush1.bf16.msra.mxu0 %v1450_v39 }
  0x3c   :  { %659 = vmatprep.subr.bf16.mxu0 %v1455_v40 }
  0x3f   :  { %660 = vmatpush1.bf16.msra.mxu0 %v1453_v41 }
  0x40   :  { %12 = vsyncpa [#allocation3], 0  ;;  %661 = vmatprep.subr.bf16.mxu0 %v1458_v42  ;;  %v1461_v44 = vld [vmem:[%s2174_s3 + $0xd4] ss:$8 sps:$4 sm:$0xff]   ;;  %v1459_v45 = vld [vmem:[%s2174_s3 + $0xd0] ss:$8 sps:$4 sm:$0xff]   ;;  %v47_v9 = vlaneseq }
  0x41   :  { %v1464_v46 = vld [vmem:[%s2174_s3 + $0xe4] ss:$8 sps:$4 sm:$0xff]   ;;  %v1462_v47 = vld [vmem:[%s2174_s3 + $0xe0] ss:$8 sps:$4 sm:$0xff]   ;;  %v1467_v48 = vld [vmem:[%s2174_s3 + $0xf4] ss:$8 sps:$4 sm:$0xff]  }
  0x42   :  { %v1465_v49 = vld [vmem:[%s2174_s3 + $0xf0] ss:$8 sps:$4 sm:$0xff]   ;;  %v1470_v50 = vld [vmem:[%s2174_s3 + $0x104] ss:$8 sps:$4 sm:$0xff]   ;;  %v1900_v12 = vshrl.u32 %v47_v9, 7  ;;  %vm1224_vm3 = vcmask 1043456  }
  0x43   :  { %662 = vmatpush1.bf16.msra.mxu0 %v1456_v43  ;;  %v1516_v51 = vld [vmem:[%s2176_s5] ss:$16 sps:$4 sm:$0xff]   ;;  %v1518_v52 = vld [vmem:[%s2176_s5 + $0x4] ss:$16 sps:$4 sm:$0xff]   ;;  %vm1225_vm4 = vcmask 261124  }
  0x44   :  { %663 = vmatprep.subr.bf16.mxu0 %v1461_v44  ;;  %v1521_v53 = vld [vmem:[%s2176_s5 + $0x24] ss:$16 sps:$4 sm:$0xff]   ;;  %1133 = vmatprep.subr.bf16.mxu1 %v1518_v52  ;;  %v1519_v54 = vld [vmem:[%s2176_s5 + $0x20] ss:$16 sps:$4 sm:$0xff]   ;;  %v1909_v15 = vsub.s32 0, %v1900_v12  ;;  %v1920_v18 = vsub.s32 1, %v1900_v12  ;;  %vm1226_vm5 = vmor %vm1225_vm4, %vm1224_vm3 }
  0x45   :  { %1134 = vmatpush1.bf16.msra.mxu1 %v1516_v51  ;;  %v1524_v55 = vld [vmem:[%s2176_s5 + $0x44] ss:$16 sps:$4 sm:$0xff]   ;;  %v1522_v56 = vld [vmem:[%s2176_s5 + $0x40] ss:$16 sps:$4 sm:$0xff]   ;;  %v61_v23 = vsub.s32 3, %v1900_v12 }
  0x46   :  { %1135 = vmatprep.subr.bf16.mxu1 %v1521_v53  ;;  %v1527_v57 = vld [vmem:[%s2176_s5 + $0x64] ss:$16 sps:$4 sm:$0xff]   ;;  %v1525_v58 = vld [vmem:[%s2176_s5 + $0x60] ss:$16 sps:$4 sm:$0xff]  }
  0x47   :  { %664 = vmatpush1.bf16.msra.mxu0 %v1459_v45  ;;  %v1530_v59 = vld [vmem:[%s2176_s5 + $0x84] ss:$16 sps:$4 sm:$0xff]   ;;  %v1528_v60 = vld [vmem:[%s2176_s5 + $0x80] ss:$16 sps:$4 sm:$0xff]  }
  0x48   :  { %665 = vmatprep.subr.bf16.mxu0 %v1464_v46  ;;  %v1533_v61 = vld [vmem:[%s2176_s5 + $0xa4] ss:$16 sps:$4 sm:$0xff]   ;;  %v1531_v62 = vld [vmem:[%s2176_s5 + $0xa0] ss:$16 sps:$4 sm:$0xff]  }
  0x49   :  { %1136 = vmatpush1.bf16.msra.mxu1 %v1519_v54  ;;  %v1536_v63 = vld [vmem:[%s2176_s5 + $0xc4] ss:$16 sps:$4 sm:$0xff]   ;;  %v1534_v0 = vld [vmem:[%s2176_s5 + $0xc0] ss:$16 sps:$4 sm:$0xff]  }
  0x4a   :  { %1137 = vmatprep.subr.bf16.mxu1 %v1524_v55  ;;  %v1539_v1 = vld [vmem:[%s2176_s5 + $0xe4] ss:$16 sps:$4 sm:$0xff]   ;;  %v1537_v2 = vld [vmem:[%s2176_s5 + $0xe0] ss:$16 sps:$4 sm:$0xff]  }
  0x4b   :  { %666 = vmatpush1.bf16.msra.mxu0 %v1462_v47  ;;  %v1542_v3 = vld [vmem:[%s2176_s5 + $0x104] ss:$16 sps:$4 sm:$0xff]   ;;  %v1540_v4 = vld [vmem:[%s2176_s5 + $0x100] ss:$16 sps:$4 sm:$0xff]  }
  0x4c   :  { %667 = vmatprep.subr.bf16.mxu0 %v1467_v48  ;;  %v1545_v5 = vld [vmem:[%s2176_s5 + $0x124] ss:$16 sps:$4 sm:$0xff]   ;;  %v1543_v6 = vld [vmem:[%s2176_s5 + $0x120] ss:$16 sps:$4 sm:$0xff]  }
  0x4d   :  { %1138 = vmatpush1.bf16.msra.mxu1 %v1522_v56  ;;  %v1548_v7 = vld [vmem:[%s2176_s5 + $0x144] ss:$16 sps:$4 sm:$0xff]   ;;  %v1546_v8 = vld [vmem:[%s2176_s5 + $0x140] ss:$16 sps:$4 sm:$0xff]  }
  0x4e   :  { %1139 = vmatprep.subr.bf16.mxu1 %v1527_v57  ;;  %v1551_v10 = vld [vmem:[%s2176_s5 + $0x164] ss:$16 sps:$4 sm:$0xff]   ;;  %v1549_v11 = vld [vmem:[%s2176_s5 + $0x160] ss:$16 sps:$4 sm:$0xff]  }
  0x4f   :  { %668 = vmatpush1.bf16.msra.mxu0 %v1465_v49  ;;  %v1554_v13 = vld [vmem:[%s2176_s5 + $0x184] ss:$16 sps:$4 sm:$0xff]   ;;  %v1552_v14 = vld [vmem:[%s2176_s5 + $0x180] ss:$16 sps:$4 sm:$0xff]  }
  0x50   :  { %678 = vmatprep.subr.bf16.mxu0 %v1470_v50  ;;  %v1557_v16 = vld [vmem:[%s2176_s5 + $0x1a4] ss:$16 sps:$4 sm:$0xff]   ;;  %v1917_v17 = vld [vmem:[%s2173_s2] sm:$0xf]  ;;  %v1471_v41 = vld [vmem:[%s2174_s3 + $0x110] ss:$8 sps:$4 sm:$0xff]  }
  0x51   :  { %1140 = vmatpush1.bf16.msra.mxu1 %v1525_v58  ;;  %v1555_v19 = vld [vmem:[%s2176_s5 + $0x1a0] ss:$16 sps:$4 sm:$0xff]   ;;  %v50_v20 = vrot.slane %v1917_v17, %v1909_v15  ;;  %v54_v21 = vrot.slane %v1917_v17, %v1920_v18  ;;  %v62_v31 = vrot.slane %v1917_v17, %v61_v23  ;;  %v1473_v36 = vld [vmem:[%s2174_s3 + $0x114] ss:$8 sps:$4 sm:$0xff]   ;;  %v1476_v43 = vld [vmem:[%s2174_s3 + $0x124] ss:$8 sps:$4 sm:$0xff]  }
  0x52   :  { %1141 = vmatprep.subr.bf16.mxu1 %v1530_v59  ;;  %v1468_v33 = vld [vmem:[%s2174_s3 + $0x100] ss:$8 sps:$4 sm:$0xff]   ;;  %v1479_v46 = vld [vmem:[%s2174_s3 + $0x134] ss:$8 sps:$4 sm:$0xff]   ;;  %v1477_v47 = vld [vmem:[%s2174_s3 + $0x130] ss:$8 sps:$4 sm:$0xff]  }
  0x53   :  { %v1474_v45 = vld [vmem:[%s2174_s3 + $0x120] ss:$8 sps:$4 sm:$0xff]   ;;  %v1482_v48 = vld [vmem:[%s2174_s3 + $0x144] ss:$8 sps:$4 sm:$0xff]   ;;  %v1485_v50 = vld [vmem:[%s2174_s3 + $0x154] ss:$8 sps:$4 sm:$0xff]  }
  0x54   :  { %v1480_v49 = vld [vmem:[%s2174_s3 + $0x140] ss:$8 sps:$4 sm:$0xff]   ;;  %v1483_v51 = vld [vmem:[%s2174_s3 + $0x150] ss:$8 sps:$4 sm:$0xff]   ;;  %v1488_v52 = vld [vmem:[%s2174_s3 + $0x164] ss:$8 sps:$4 sm:$0xff]  }
  0x55   :  { %1142 = vmatpush1.bf16.msra.mxu1 %v1528_v60  ;;  %v1486_v53 = vld [vmem:[%s2174_s3 + $0x160] ss:$8 sps:$4 sm:$0xff]   ;;  %v1491_v54 = vld [vmem:[%s2174_s3 + $0x174] ss:$8 sps:$4 sm:$0xff]   ;;  %v1489_v55 = vld [vmem:[%s2174_s3 + $0x170] ss:$8 sps:$4 sm:$0xff]  }
  0x56   :  { %1143 = vmatprep.subr.bf16.mxu1 %v1533_v61  ;;  %v1494_v56 = vld [vmem:[%s2174_s3 + $0x184] ss:$8 sps:$4 sm:$0xff]   ;;  %v1492_v57 = vld [vmem:[%s2174_s3 + $0x180] ss:$8 sps:$4 sm:$0xff]   ;;  %v1497_v58 = vld [vmem:[%s2174_s3 + $0x194] ss:$8 sps:$4 sm:$0xff]  }
  0x57   :  { %v1495_v59 = vld [vmem:[%s2174_s3 + $0x190] ss:$8 sps:$4 sm:$0xff]   ;;  %v1500_v60 = vld [vmem:[%s2174_s3 + $0x1a4] ss:$8 sps:$4 sm:$0xff]   ;;  %v1498_v61 = vld [vmem:[%s2174_s3 + $0x1a0] ss:$8 sps:$4 sm:$0xff]  }
  0x58   :  { %v1515_v9 = vld [vmem:[%s2174_s3 + $0x1f4] ss:$8 sps:$4 sm:$0xff]  }
  0x59   :  { %1144 = vmatpush1.bf16.msra.mxu1 %v1531_v62  ;;  %v1503_v62 = vld [vmem:[%s2174_s3 + $0x1b4] ss:$8 sps:$4 sm:$0xff]  }
  0x5a   :  { %1145 = vmatprep.subr.bf16.mxu1 %v1536_v63  ;;  %v1501_v63 = vld [vmem:[%s2174_s3 + $0x1b0] ss:$8 sps:$4 sm:$0xff]  }
  0x5d   :  { %1146 = vmatpush1.bf16.msra.mxu1 %v1534_v0  ;;  %v1506_v0 = vld [vmem:[%s2174_s3 + $0x1c4] ss:$8 sps:$4 sm:$0xff]  }
  0x5e   :  { %1147 = vmatprep.subr.bf16.mxu1 %v1539_v1  ;;  %v1504_v1 = vld [vmem:[%s2174_s3 + $0x1c0] ss:$8 sps:$4 sm:$0xff]  }
  0x61   :  { %1148 = vmatpush1.bf16.msra.mxu1 %v1537_v2  ;;  %v57_v2 = vsub.s32 2, %v1900_v12 }
  0x62   :  { %1149 = vmatprep.subr.bf16.mxu1 %v1542_v3  ;;  %v1509_v3 = vld [vmem:[%s2174_s3 + $0x1d4] ss:$8 sps:$4 sm:$0xff]  }
  0x65   :  { %1150 = vmatpush1.bf16.msra.mxu1 %v1540_v4  ;;  %v1507_v4 = vld [vmem:[%s2174_s3 + $0x1d0] ss:$8 sps:$4 sm:$0xff]  }
  0x66   :  { %1151 = vmatprep.subr.bf16.mxu1 %v1545_v5  ;;  %v58_v5 = vrot.slane %v1917_v17, %v57_v2  ;;  %v1563_v17 = vld [vmem:[%s2176_s5 + $0x1e4] ss:$16 sps:$4 sm:$0xff]  }
  0x69   :  { %1152 = vmatpush1.bf16.msra.mxu1 %v1543_v6  ;;  %v1512_v6 = vld [vmem:[%s2174_s3 + $0x1e4] ss:$8 sps:$4 sm:$0xff]  }
  0x6a   :  { %1153 = vmatprep.subr.bf16.mxu1 %v1548_v7  ;;  %v1510_v7 = vld [vmem:[%s2174_s3 + $0x1e0] ss:$8 sps:$4 sm:$0xff]  }
  0x6d   :  { %1154 = vmatpush1.bf16.msra.mxu1 %v1546_v8 }
  0x6e   :  { %1155 = vmatprep.subr.bf16.mxu1 %v1551_v10  ;;  %v1513_v10 = vld [vmem:[%s2174_s3 + $0x1f0] ss:$8 sps:$4 sm:$0xff]  }
  0x71   :  { %1156 = vmatpush1.bf16.msra.mxu1 %v1549_v11 }
  0x72   :  { %1157 = vmatprep.subr.bf16.mxu1 %v1554_v13 }
  0x75   :  { %1158 = vmatpush1.bf16.msra.mxu1 %v1552_v14  ;;  %v1560_v14 = vld [vmem:[%s2176_s5 + $0x1c4] ss:$16 sps:$4 sm:$0xff]  }
  0x76   :  { %1159 = vmatprep.subr.bf16.mxu1 %v1557_v16  ;;  %v1558_v16 = vld [vmem:[%s2176_s5 + $0x1c0] ss:$16 sps:$4 sm:$0xff]  }
  0x79   :  { %1160 = vmatpush1.bf16.msra.mxu1 %v1555_v19  ;;  %v1561_v19 = vld [vmem:[%s2176_s5 + $0x1e0] ss:$16 sps:$4 sm:$0xff]  }
  0x7a   :  { %1161 = vmatprep.subr.bf16.mxu1 %v1560_v14 }
  0x7d   :  { %1162 = vmatpush1.bf16.msra.mxu1 %v1558_v16 }
  0x7e   :  { %1163 = vmatprep.subr.bf16.mxu1 %v1563_v17 }
  0x81   :  { %1164 = vmatpush1.bf16.msra.mxu1 %v1561_v19 }
  0xe5   :  { %v185_v22 = vpop.f32.mrb[0].mxu0  ;;  %v1936_v34 = vpop.f32.mrb[0].mxu1 }
  0xe6   :  { %v186_v24 = vadd.f32 %v185_v22, %v50_v20  ;;  %v187_v25 = vpop.f32.mrb[1].mxu0  ;;  %v228_v37 = vpop.f32.mrb[1].mxu1  ;;  %v227_v8 = vadd.f32 %v1936_v34, %v58_v5  ;;  %v1566_v20 = vld [vmem:[%s2176_s5 + $0xc] ss:$16 sps:$4 sm:$0xff]   ;;  %v791_v5 = vld [vmem:[%s2177_s6] sm:$0xf] }
  0xe7   :  { %v188_v26 = vadd.f32 %v187_v25, %v54_v21  ;;  %v189_v27 = vpop.f32.mrb[2].mxu0  ;;  %v229_v38 = vadd.f32 %v228_v37, %v62_v31  ;;  %v230_v39 = vpop.f32.mrb[2].mxu1  ;;  %1174 = vmatprep.subr.bf16.mxu1 %v1566_v20  ;;  %v305_v21 = vld [vmem:[%s2175_s4] sm:$0x3]  ;;  %v804_v17 = vrot.slane %v791_v5, %v57_v2  ;;  %v808_v19 = vrot.slane %v791_v5, %v61_v23 }
  0xe8   :  { %v233_v28 = vmax.f32 %v186_v24, 0.0  ;;  %v190_v29 = vpop.f32.mrb[3].mxu0  ;;  %v231_v40 = vpop.f32.mrb[3].mxu1  ;;  %v235_v11 = vmax.f32 %v227_v8, 0.0  ;;  %v310_v22 = vrot.slane %v305_v21, %v1909_v15  ;;  %v314_v24 = vrot.slane %v305_v21, %v1920_v18  ;;  %v1567_v39 = vld [vmem:[%s2176_s5 + $0x28] ss:$16 sps:$4 sm:$0xff]  }
  0xe9   :  { %v234_v30 = vmax.f32 %v188_v26, 0.0  ;;  %v236_v42 = vmax.f32 %v229_v38, 0.0  ;;  %v1569_v38 = vld [vmem:[%s2176_s5 + $0x2c] ss:$16 sps:$4 sm:$0xff]  }
  0xea   :  { %v237_v35 = vpack.c.bf16 %v233_v28, %v233_v28  ;;  %v239_v13 = vpack.c.bf16 %v235_v11, %v235_v11  ;;  %v1572_v40 = vld [vmem:[%s2176_s5 + $0x4c] ss:$16 sps:$4 sm:$0xff]  }
  0xeb   :  { %v238_v32 = vpack.c.bf16 %v234_v30, %v234_v30  ;;  %v240_v44 = vpack.c.bf16 %v236_v42, %v236_v42  ;;  %v1575_v42 = vld [vmem:[%s2176_s5 + $0x6c] ss:$16 sps:$4 sm:$0xff]  }
  0xed   :  { %669 = vmatprep.mubr.bf16.mxu0 %v238_v32 }
  0xee   :  { %670 = vmatmul.mubr.bf16.vlgmr.msra.gmra.mrb[4].mxu0 %v237_v35 }
  0xef   :  { %679 = vmatpush1.bf16.msra.mxu0 %v1468_v33  ;;  %710 = vmatprep.mubr.bf16.mxu0 %v240_v44  ;;  %v1578_v44 = vld [vmem:[%s2176_s5 + $0x8c] ss:$16 sps:$4 sm:$0xff]  }
  0xf0   :  { %680 = vmatprep.subr.bf16.mxu0 %v1473_v36  ;;  %v1564_v36 = vld [vmem:[%s2176_s5 + $0x8] ss:$16 sps:$4 sm:$0xff]  }
  0xf3   :  { %681 = vmatpush1.bf16.msra.mxu0 %v1471_v41  ;;  %v1570_v41 = vld [vmem:[%s2176_s5 + $0x48] ss:$16 sps:$4 sm:$0xff]  }
  0xf4   :  { %682 = vmatprep.subr.bf16.mxu0 %v1476_v43  ;;  %v1573_v43 = vld [vmem:[%s2176_s5 + $0x68] ss:$16 sps:$4 sm:$0xff]  }
  0xf7   :  { %683 = vmatpush1.bf16.msra.mxu0 %v1474_v45  ;;  %v1576_v45 = vld [vmem:[%s2176_s5 + $0x88] ss:$16 sps:$4 sm:$0xff]  }
  0xf8   :  { %684 = vmatprep.subr.bf16.mxu0 %v1479_v46  ;;  %v1581_v46 = vld [vmem:[%s2176_s5 + $0xac] ss:$16 sps:$4 sm:$0xff]  }
  0xfb   :  { %685 = vmatpush1.bf16.msra.mxu0 %v1477_v47  ;;  %v1579_v47 = vld [vmem:[%s2176_s5 + $0xa8] ss:$16 sps:$4 sm:$0xff]  }
  0xfc   :  { %686 = vmatprep.subr.bf16.mxu0 %v1482_v48  ;;  %v1584_v48 = vld [vmem:[%s2176_s5 + $0xcc] ss:$16 sps:$4 sm:$0xff]  }
  0xff   :  { %687 = vmatpush1.bf16.msra.mxu0 %v1480_v49  ;;  %v1582_v49 = vld [vmem:[%s2176_s5 + $0xc8] ss:$16 sps:$4 sm:$0xff]  }
 0x100   :  { %688 = vmatprep.subr.bf16.mxu0 %v1485_v50  ;;  %v1587_v50 = vld [vmem:[%s2176_s5 + $0xec] ss:$16 sps:$4 sm:$0xff]  }
 0x103   :  { %689 = vmatpush1.bf16.msra.mxu0 %v1483_v51  ;;  %v1585_v51 = vld [vmem:[%s2176_s5 + $0xe8] ss:$16 sps:$4 sm:$0xff]  }
 0x104   :  { %690 = vmatprep.subr.bf16.mxu0 %v1488_v52  ;;  %v1590_v52 = vld [vmem:[%s2176_s5 + $0x10c] ss:$16 sps:$4 sm:$0xff]  }
 0x107   :  { %691 = vmatpush1.bf16.msra.mxu0 %v1486_v53  ;;  %v1588_v53 = vld [vmem:[%s2176_s5 + $0x108] ss:$16 sps:$4 sm:$0xff]  }
 0x108   :  { %692 = vmatprep.subr.bf16.mxu0 %v1491_v54  ;;  %v1593_v54 = vld [vmem:[%s2176_s5 + $0x12c] ss:$16 sps:$4 sm:$0xff]  }
 0x10b   :  { %693 = vmatpush1.bf16.msra.mxu0 %v1489_v55  ;;  %v1591_v55 = vld [vmem:[%s2176_s5 + $0x128] ss:$16 sps:$4 sm:$0xff]  }
 0x10c   :  { %694 = vmatprep.subr.bf16.mxu0 %v1494_v56  ;;  %v1596_v56 = vld [vmem:[%s2176_s5 + $0x14c] ss:$16 sps:$4 sm:$0xff]  }
 0x10f   :  { %695 = vmatpush1.bf16.msra.mxu0 %v1492_v57  ;;  %v1594_v57 = vld [vmem:[%s2176_s5 + $0x148] ss:$16 sps:$4 sm:$0xff]  }
 0x110   :  { %696 = vmatprep.subr.bf16.mxu0 %v1497_v58  ;;  %v1599_v58 = vld [vmem:[%s2176_s5 + $0x16c] ss:$16 sps:$4 sm:$0xff]  }
 0x113   :  { %697 = vmatpush1.bf16.msra.mxu0 %v1495_v59  ;;  %v1597_v59 = vld [vmem:[%s2176_s5 + $0x168] ss:$16 sps:$4 sm:$0xff]  }
 0x114   :  { %698 = vmatprep.subr.bf16.mxu0 %v1500_v60  ;;  %v1602_v60 = vld [vmem:[%s2176_s5 + $0x18c] ss:$16 sps:$4 sm:$0xff]  }
 0x117   :  { %699 = vmatpush1.bf16.msra.mxu0 %v1498_v61  ;;  %v1600_v61 = vld [vmem:[%s2176_s5 + $0x188] ss:$16 sps:$4 sm:$0xff]  }
 0x118   :  { %700 = vmatprep.subr.bf16.mxu0 %v1503_v62  ;;  %v1605_v62 = vld [vmem:[%s2176_s5 + $0x1ac] ss:$16 sps:$4 sm:$0xff]  }
 0x11b   :  { %701 = vmatpush1.bf16.msra.mxu0 %v1501_v63  ;;  %v1603_v63 = vld [vmem:[%s2176_s5 + $0x1a8] ss:$16 sps:$4 sm:$0xff]  }
 0x11c   :  { %702 = vmatprep.subr.bf16.mxu0 %v1506_v0  ;;  %v1608_v0 = vld [vmem:[%s2176_s5 + $0x1cc] ss:$16 sps:$4 sm:$0xff]  }
 0x11f   :  { %703 = vmatpush1.bf16.msra.mxu0 %v1504_v1  ;;  %v1606_v1 = vld [vmem:[%s2176_s5 + $0x1c8] ss:$16 sps:$4 sm:$0xff]  }
 0x120   :  { %704 = vmatprep.subr.bf16.mxu0 %v1509_v3  ;;  %v1611_v3 = vld [vmem:[%s2176_s5 + $0x1ec] ss:$16 sps:$4 sm:$0xff]  }
 0x123   :  { %705 = vmatpush1.bf16.msra.mxu0 %v1507_v4  ;;  %v1609_v4 = vld [vmem:[%s2176_s5 + $0x1e8] ss:$16 sps:$4 sm:$0xff]   ;;  %s1637_s5 = smov [#allocation2]  }
 0x124   :  { %706 = vmatprep.subr.bf16.mxu0 %v1512_v6  ;;  %v796_v6 = vrot.slane %v791_v5, %v1909_v15  ;;  %s1234_s6 = sshll.u32 %s1637_s5, 4  ;;  %s1235_s6 = int_to_ptr.vmem [resolvable:$true] %s1234_s6 }
 0x125   :  { %s1612_s12 = scalar_lea.vmem %s1235_s6, 256  ;;  %p1617_p1 = scmp.lt.s32.totalorder %s1235_s6, %s1235_s6 }
 0x126   :  { %p1613_p0 = scmp.ne.s32.totalorder %s1235_s6, %s1612_s12  ;;  %p1618_p2 = scmp.lt.s32.totalorder %s1612_s12, %s1612_s12 }
 0x127   :  { %707 = vmatpush1.bf16.msra.mxu0 %v1510_v7  ;;  %v800_v7 = vrot.slane %v791_v5, %v1920_v18 }
 0x128   :  { %708 = vmatprep.subr.bf16.mxu0 %v1515_v9  ;;  %p1619_p3 = por %p1618_p2, %p1617_p1 }
 0x12a   :  { %p1620_p4 = pnand %p1619_p3, %p1613_p0 }
 0x12b   :  { %709 = vmatpush1.bf16.msra.mxu0 %v1513_v10 }
 0x12e   :  { %711 = vmatmul.mubr.bf16.vlgmr.msra.gmra.mrb[4].mxu0 %v239_v13 }
 0x201   :  { %v712_v25 = vpop.f32.mrb[4].mxu0 }
 0x202   :  { %v1388_v26 = vadd.f32 %v712_v25, %v310_v22  ;;  %v714_v27 = vpop.f32.mrb[5].mxu0 }
 0x203   :  { %v1389_v28 = vadd.f32 %v714_v27, %v314_v24  ;;  %v716_v29 = vpop.f32.mrb[6].mxu0 }
 0x204   :  { %vm719_vm1 = vcmp.ge.f32.partialorder %v1388_v26, 0.0  ;;  %v721_v30 = vmul.f32 0.01, %v1388_v26  ;;  %v717_v31 = vpop.f32.mrb[7].mxu0 }
 0x205   :  { %vm720_vm2 = vcmp.ge.f32.partialorder %v1389_v28, 0.0  ;;  %v722_v32 = vmul.f32 0.01, %v1389_v28 }
 0x206   :  { %v723_v33 = vsel %vm719_vm1, %v1388_v26, %v721_v30 }
 0x207   :  { %v724_v34 = vsel %vm720_vm2, %v1389_v28, %v722_v32  ;;  %v2056_v37 = vpack.c.bf16 %v723_v33, %v723_v33 }
 0x208   :  { %v726_v35 = vpack.c.bf16 %v724_v34, %v724_v34 }
 0x20a   :  { %1165 = vmatprep.mubr.bf16.mxu1 %v726_v35 }
 0x20b   :  { %1166 = vmatmul.mubr.bf16.vlgmr.msra.gmra.mrb[4].mxu1 %v2056_v37 }
 0x20c   :  { %1175 = vmatpush1.bf16.msra.mxu1 %v1564_v36  ;;  %1206 = vmatprep.mubr.bf16.mxu1 %v726_v35 }
 0x20d   :  { %1176 = vmatprep.subr.bf16.mxu1 %v1569_v38 }
 0x210   :  { %1177 = vmatpush1.bf16.msra.mxu1 %v1567_v39 }
 0x211   :  { %1178 = vmatprep.subr.bf16.mxu1 %v1572_v40 }
 0x214   :  { %1179 = vmatpush1.bf16.msra.mxu1 %v1570_v41 }
 0x215   :  { %1180 = vmatprep.subr.bf16.mxu1 %v1575_v42 }
 0x218   :  { %1181 = vmatpush1.bf16.msra.mxu1 %v1573_v43 }
 0x219   :  { %1182 = vmatprep.subr.bf16.mxu1 %v1578_v44 }
 0x21c   :  { %1183 = vmatpush1.bf16.msra.mxu1 %v1576_v45 }
 0x21d   :  { %1184 = vmatprep.subr.bf16.mxu1 %v1581_v46 }
 0x220   :  { %1185 = vmatpush1.bf16.msra.mxu1 %v1579_v47 }
 0x221   :  { %1186 = vmatprep.subr.bf16.mxu1 %v1584_v48 }
 0x224   :  { %1187 = vmatpush1.bf16.msra.mxu1 %v1582_v49 }
 0x225   :  { %1188 = vmatprep.subr.bf16.mxu1 %v1587_v50 }
 0x228   :  { %1189 = vmatpush1.bf16.msra.mxu1 %v1585_v51 }
 0x229   :  { %1190 = vmatprep.subr.bf16.mxu1 %v1590_v52 }
 0x22c   :  { %1191 = vmatpush1.bf16.msra.mxu1 %v1588_v53 }
 0x22d   :  { %1192 = vmatprep.subr.bf16.mxu1 %v1593_v54 }
 0x230   :  { %1193 = vmatpush1.bf16.msra.mxu1 %v1591_v55 }
 0x231   :  { %1194 = vmatprep.subr.bf16.mxu1 %v1596_v56 }
 0x234   :  { %1195 = vmatpush1.bf16.msra.mxu1 %v1594_v57 }
 0x235   :  { %1196 = vmatprep.subr.bf16.mxu1 %v1599_v58 }
 0x238   :  { %1197 = vmatpush1.bf16.msra.mxu1 %v1597_v59 }
 0x239   :  { %1198 = vmatprep.subr.bf16.mxu1 %v1602_v60 }
 0x23c   :  { %1199 = vmatpush1.bf16.msra.mxu1 %v1600_v61 }
 0x23d   :  { %1200 = vmatprep.subr.bf16.mxu1 %v1605_v62 }
 0x240   :  { %1201 = vmatpush1.bf16.msra.mxu1 %v1603_v63 }
 0x241   :  { %1202 = vmatprep.subr.bf16.mxu1 %v1608_v0 }
 0x244   :  { %1203 = vmatpush1.bf16.msra.mxu1 %v1606_v1 }
 0x245   :  { %1204 = vmatprep.subr.bf16.mxu1 %v1611_v3 }
 0x248   :  { %1205 = vmatpush1.bf16.msra.mxu1 %v1609_v4 }
 0x24b   :  { %1207 = vmatmul.mubr.bf16.vlgmr.msra.gmra.mrb[8].mxu1 %v2056_v37 }
 0x2de   :  { %v1167_v8 = vpop.f32.mrb[4].mxu1 }
 0x2df   :  { %v1168_v9 = vadd.f32 %v1167_v8, %v796_v6  ;;  %v1169_v10 = vpop.f32.mrb[5].mxu1 }
 0x2e0   :  { %v1170_v11 = vadd.f32 %v1169_v10, %v800_v7  ;;  %v1171_v13 = vpop.f32.mrb[6].mxu1 }
 0x2e1   :  { %v1172_v14 = vpop.f32.mrb[7].mxu1 }
 0x2e2   :  { %v1219_v16 = vcombine.low %v1168_v9, %v1170_v11 }
 0x2e4   :  { %1223 = vst [vmem:[#allocation2] sm:$0xff] %v1219_v16 }
 0x31e   :  { %v1208_v20 = vpop.f32.mrb[8].mxu1 }
 0x31f   :  { %v1209_v15 = vadd.f32 %v1208_v20, %v804_v17  ;;  %v1210_v21 = vpop.f32.mrb[9].mxu1 }
 0x320   :  { %v1211_v18 = vadd.f32 %v1210_v21, %v808_v19  ;;  %v1212_v22 = vpop.f32.mrb[10].mxu1 }
 0x321   :  { %v1213_v24 = vpop.f32.mrb[11].mxu1 }
 0x322   :  { %v1220_v25 = vcombine.low %v1209_v15, %v1211_v18 }
 0x324   :  { %1227 = vst.msk [vmem:[#allocation2 + $0x8] sm:$0xff] %vm1226_vm5, %v1220_v25 }
 0x325   :  { %1623 = shalt.err (!%p1620_p4)
}
 0x326   :  { %s1624_s15 = scalar_lea.hbm %s2178_s7, 256 }
 0x327   :  { %p1625_p5 = scmp.ne.s32.totalorder %s2178_s7, %s1624_s15  ;;  %p1628_p6 = scmp.lt.u32.totalorder %s1624_s15, %s2178_s7 }
 0x329   :  { %p1630_p7 = pnand %p1628_p6, %p1625_p5 }
 0x32b   :  { %1633 = shalt.err (!%p1630_p7)
}
 0x32c   :  { %1237 = dma.vmem_to_hbm [thread:$0]  %s1235_s6, 256, %s2178_s7, [#allocation3]  }
 0x32d   :  { %1634 = dma.done.wait [#allocation3], 256  }
 0x32e   :  { %1635 = vsyncadd [#allocation3], 4294967040 }
 0x32f   :  { %1241 = vsyncpa [#allocation3], 1 }

</bundles_post_ra>
